<compile_context>
chip_gen: v7x
topology: tpu7x:2x2x1
jax: 0.10.0
libtpu: 0.0.40
codegen_flags: <defaults>
</compile_context>

<pallas_src>
import functools
import math

import jax
import jax.numpy as jnp
import numpy as np
from jax import lax
from jax.experimental import pallas as pl
from jax.experimental.pallas import tpu as pltpu


# ----------------------------------------------------------------------------
# Per-generation defaults (VMEM scoped limit + matmul tiles)
# ----------------------------------------------------------------------------
_DEFAULTS = None


def _tpu_defaults():
    global _DEFAULTS
    if _DEFAULTS is None:
        cap = None
        try:
            info = pltpu.get_tpu_info()
            cap = getattr(info, "vmem_capacity_bytes", None)
        except Exception:
            cap = None
        if cap is None:
            cap = 64 * 1024 * 1024
        if cap >= 128 * 1024 * 1024:        # v5e / v6e: 128 MiB VMEM
            _DEFAULTS = dict(vmem_limit=64 * 1024 * 1024, tm=512, tn=256, tk=1024)
        else:                               # v7x: 64 MiB VMEM per core
            _DEFAULTS = dict(vmem_limit=32 * 1024 * 1024, tm=256, tn=256, tk=512)
    return _DEFAULTS


def _pick_tile(dim, pref, align):
    """Largest tile <= pref that is a multiple of `align` and divides dim."""
    if dim <= pref:
        return dim
    t = (pref // align) * align
    while t >= align:
        if dim % t == 0:
            return t
        t -= align
    return dim


def _apply_act(act, x):
    if act == "tanh":
        return jnp.tanh(x)
    if act == "sigmoid":
        return jax.nn.sigmoid(x)
    if act == "silu":
        return x * jax.nn.sigmoid(x)
    if act == "relu_sq":
        return jnp.square(jnp.maximum(x, 0.0))
    return x


# ----------------------------------------------------------------------------
# Tiled matmul (optional bias / activation / gate fused in the epilogue)
# ----------------------------------------------------------------------------
def _mm_kernel(activation, has_bias, has_gate, a_ref, b_ref, *rest):
    rest = list(rest)
    bias_ref = rest.pop(0) if has_bias else None
    gate_ref = rest.pop(0) if has_gate else None
    o_ref, acc_ref = rest

    @pl.when(pl.program_id(2) == 0)
    def _():
        acc_ref[...] = jnp.zeros_like(acc_ref)

    acc_ref[...] += jnp.dot(a_ref[...].astype(jnp.bfloat16),
                            b_ref[...].astype(jnp.bfloat16),
                            preferred_element_type=jnp.float32)

    @pl.when(pl.program_id(2) == pl.num_programs(2) - 1)
    def _():
        acc = acc_ref[...]
        if has_bias:
            acc = acc + bias_ref[...]
        acc = _apply_act(activation, acc)
        if has_gate:
            acc = acc * gate_ref[...].astype(jnp.float32)
        o_ref[...] = acc.astype(o_ref.dtype)


def matmul(a, b, *, activation=None, bias=None, gate=None,
           out_dtype=jnp.float32, tm=None, tn=None, tk=None):
    d = _tpu_defaults()
    tm = d["tm"] if tm is None else tm
    tn = d["tn"] if tn is None else tn
    tk = d["tk"] if tk is None else tk
    M, K = a.shape
    K2, N = b.shape
    assert K == K2
    tm = _pick_tile(M, tm, 16)
    tn = _pick_tile(N, tn, 128)
    tk = _pick_tile(K, tk, 128)
    grid = (M // tm, N // tn, K // tk)

    in_specs = [pl.BlockSpec((tm, tk), lambda i, j, k: (i, k)),
                pl.BlockSpec((tk, tn), lambda i, j, k: (k, j))]
    operands = [a.astype(jnp.bfloat16), b.astype(jnp.bfloat16)]
    if bias is not None:
        in_specs.append(pl.BlockSpec((1, tn), lambda i, j, k: (0, j)))
        operands.append(bias.reshape(1, N).astype(jnp.float32))
    if gate is not None:
        in_specs.append(pl.BlockSpec((tm, tn), lambda i, j, k: (i, j)))
        operands.append(gate)

    return pl.pallas_call(
        functools.partial(_mm_kernel, activation, bias is not None,
                          gate is not None),
        grid=grid,
        in_specs=in_specs,
        out_specs=pl.BlockSpec((tm, tn), lambda i, j, k: (i, j)),
        out_shape=jax.ShapeDtypeStruct((M, N), out_dtype),
        scratch_shapes=[pltpu.VMEM((tm, tn), jnp.float32)],
        compiler_params=pltpu.CompilerParams(
            dimension_semantics=("parallel", "parallel", "arbitrary"),
            vmem_limit_bytes=d["vmem_limit"]),
    )(*operands)


# ----------------------------------------------------------------------------
# Token-shift mix + (optional per-mix LoRA) + matmul, fused
#   out = act( (x + xx*(maa + lora_a @ lora_b)) @ W )
# The mixed panel xm is cached in VMEM at j==0 and reused for j>0.
# ----------------------------------------------------------------------------
def _mix_mm_kernel(activation, has_lora, use_cache, x_ref, xx_ref, maa_ref, *rest):
    rest = list(rest)
    la_ref = lb_ref = None
    if has_lora:
        la_ref = rest.pop(0)
        lb_ref = rest.pop(0)
    w_ref = rest.pop(0)
    o_ref = rest.pop(0)
    xm_ref = rest.pop(0) if use_cache else None
    acc_ref = rest.pop(0)

    @pl.when(pl.program_id(2) == 0)
    def _():
        acc_ref[...] = jnp.zeros_like(acc_ref)

    def mixed():
        m = maa_ref[...]
        if has_lora:
            m = m + jnp.dot(la_ref[...].astype(jnp.bfloat16),
                            lb_ref[...].astype(jnp.bfloat16),
                            preferred_element_type=jnp.float32)
        xm = x_ref[...].astype(jnp.float32) + xx_ref[...].astype(jnp.float32) * m
        return xm.astype(jnp.bfloat16)

    if use_cache:
        k_idx = pl.program_id(2)

        @pl.when(pl.program_id(1) == 0)
        def _():
            xm_ref[k_idx] = mixed()

        xm_b = xm_ref[k_idx]
    else:
        xm_b = mixed()

    acc_ref[...] += jnp.dot(xm_b, w_ref[...].astype(jnp.bfloat16),
                            preferred_element_type=jnp.float32)

    @pl.when(pl.program_id(2) == pl.num_programs(2) - 1)
    def _():
        o_ref[...] = _apply_act(activation, acc_ref[...]).astype(o_ref.dtype)


def mix_matmul(x, xx, maa, w, *, lora=None, activation=None,
               out_dtype=jnp.float32, tm=None, tn=None, tk=None):
    d = _tpu_defaults()
    tm = d["tm"] if tm is None else tm
    tn = d["tn"] if tn is None else tn
    tk = d["tk"] if tk is None else tk
    M, K = x.shape
    K2, N = w.shape
    assert K == K2 and xx.shape == (M, K)
    tm = _pick_tile(M, tm, 16)
    tn = _pick_tile(N, tn, 128)
    tk = _pick_tile(K, tk, 128)
    grid = (M // tm, N // tn, K // tk)
    # Cache the mixed panel only when it would actually be re-used and the
    # i axis still gives megacore something to shard over.
    use_cache = (grid[1] > 1) and (grid[0] > 1)

    in_specs = [pl.BlockSpec((tm, tk), lambda i, j, k: (i, k)),
                pl.BlockSpec((tm, tk), lambda i, j, k: (i, k)),
                pl.BlockSpec((1, tk), lambda i, j, k: (0, k))]
    operands = [x, xx, maa.reshape(1, K).astype(jnp.float32)]
    if lora is not None:
        la, lb = lora
        Dm = la.shape[1]
        assert la.shape == (M, Dm) and lb.shape == (Dm, K)
        in_specs += [pl.BlockSpec((tm, Dm), lambda i, j, k: (i, 0)),
                     pl.BlockSpec((Dm, tk), lambda i, j, k: (0, k))]
        operands += [la, lb.astype(jnp.bfloat16)]
    in_specs.append(pl.BlockSpec((tk, tn), lambda i, j, k: (k, j)))
    operands.append(w.astype(jnp.bfloat16))

    scratch = []
    if use_cache:
        scratch.append(pltpu.VMEM((K // tk, tm, tk), jnp.bfloat16))
    scratch.append(pltpu.VMEM((tm, tn), jnp.float32))

    sem_j = "arbitrary" if use_cache else "parallel"
    return pl.pallas_call(
        functools.partial(_mix_mm_kernel, activation, lora is not None, use_cache),
        grid=grid,
        in_specs=in_specs,
        out_specs=pl.BlockSpec((tm, tn), lambda i, j, k: (i, j)),
        out_shape=jax.ShapeDtypeStruct((M, N), out_dtype),
        scratch_shapes=scratch,
        compiler_params=pltpu.CompilerParams(
            dimension_semantics=("parallel", sem_j, "arbitrary"),
            vmem_limit_bytes=d["vmem_limit"]),
    )(*operands)


# ----------------------------------------------------------------------------
# LayerNorm (row-tiled, lane-dense), bf16 output by default
# ----------------------------------------------------------------------------
def _ln_kernel(eps, x_ref, w_ref, b_ref, o_ref):
    x = x_ref[...].astype(jnp.float32)
    mu = jnp.mean(x, axis=-1, keepdims=True)
    var = jnp.mean(jnp.square(x - mu), axis=-1, keepdims=True)  # biased (torch)
    o_ref[...] = ((x - mu) * lax.rsqrt(var + eps) * w_ref[...]
                  + b_ref[...]).astype(o_ref.dtype)


def layernorm(x2d, w, b, eps=1e-5, rows=256, out_dtype=jnp.bfloat16):
    d = _tpu_defaults()
    M, C = x2d.shape
    tr = _pick_tile(M, rows, 16)
    return pl.pallas_call(
        functools.partial(_ln_kernel, eps),
        grid=(M // tr,),
        in_specs=[pl.BlockSpec((tr, C), lambda i: (i, 0)),
                  pl.BlockSpec((1, C), lambda i: (0, 0)),
                  pl.BlockSpec((1, C), lambda i: (0, 0))],
        out_specs=pl.BlockSpec((tr, C), lambda i: (i, 0)),
        out_shape=jax.ShapeDtypeStruct((M, C), out_dtype),
        compiler_params=pltpu.CompilerParams(
            dimension_semantics=("parallel",), vmem_limit_bytes=d["vmem_limit"]),
    )(x2d, w.reshape(1, C), b.reshape(1, C))


# ----------------------------------------------------------------------------
# GroupNorm (per-head) + affine + silu-gate multiply, fused.  Per-head mean /
# variance are computed with lane-dense pooling / scatter matmuls (no per-head
# unrolled XLU reductions, no concatenate relayout).
# ----------------------------------------------------------------------------
def _gn_gate_kernel(N, eps, y_ref, g_ref, pool_ref, scat_ref, w_ref, b_ref, o_ref):
    y = y_ref[...].astype(jnp.float32)                               # (R, A)
    pool = pool_ref[...]                                             # (A, H) bf16
    scat = scat_ref[...]                                             # (H, A) bf16
    inv_n = 1.0 / N
    mu_h = jnp.dot(y_ref[...], pool, preferred_element_type=jnp.float32) * inv_n
    mu = jnp.dot(mu_h.astype(jnp.bfloat16), scat,
                 preferred_element_type=jnp.float32)                 # (R, A)
    yc = y - mu
    var_h = jnp.dot((yc * yc).astype(jnp.bfloat16), pool,
                    preferred_element_type=jnp.float32) * inv_n
    var = jnp.dot(var_h.astype(jnp.bfloat16), scat,
                  preferred_element_type=jnp.float32)
    yn = yc * lax.rsqrt(var + eps)
    o_ref[...] = ((yn * w_ref[...] + b_ref[...])
                  * g_ref[...].astype(jnp.float32)).astype(o_ref.dtype)


def groupnorm_gate(y2d, g2d, w, b, H, eps, out_dtype=jnp.bfloat16, rows=256):
    d = _tpu_defaults()
    M, A = y2d.shape
    N = A // H
    tr = _pick_tile(M, rows, 16)
    ch = jnp.arange(A, dtype=jnp.int32) // N
    pool = (ch[:, None] == jnp.arange(H, dtype=jnp.int32)[None, :]
            ).astype(jnp.bfloat16)                                   # (A, H)
    scat = jnp.transpose(pool)                                       # (H, A)
    return pl.pallas_call(
        functools.partial(_gn_gate_kernel, N, eps),
        grid=(M // tr,),
        in_specs=[pl.BlockSpec((tr, A), lambda i: (i, 0)),
                  pl.BlockSpec((tr, A), lambda i: (i, 0)),
                  pl.BlockSpec((A, H), lambda i: (0, 0)),
                  pl.BlockSpec((H, A), lambda i: (0, 0)),
                  pl.BlockSpec((1, A), lambda i: (0, 0)),
                  pl.BlockSpec((1, A), lambda i: (0, 0))],
        out_specs=pl.BlockSpec((tr, A), lambda i: (i, 0)),
        out_shape=jax.ShapeDtypeStruct((M, A), out_dtype),
        compiler_params=pltpu.CompilerParams(
            dimension_semantics=("parallel",), vmem_limit_bytes=d["vmem_limit"]),
    )(y2d, g2d, pool, scat, w.reshape(1, A), b.reshape(1, A))


# ----------------------------------------------------------------------------
# Chunked WKV6 recurrence (block-parallel linear attention with per-channel
# decay).  Grid = (B, head-groups of <=512 lanes, T / (n_sub*L)); each grid
# step processes n_sub chunks of L timesteps, the per-head (N,N) state is
# carried in VMEM scratch across the "arbitrary" time axis.
# ----------------------------------------------------------------------------
def _wkv6_kernel(HG, N, L, n_sub, r_ref, k_ref, v_ref, w_ref, u_ref, y_ref,
                 state_ref):
    @pl.when(pl.program_id(2) == 0)
    def _():
        state_ref[...] = jnp.zeros_like(state_ref)

    u_all = u_ref[...].astype(jnp.float32)                 # (1, HG*N)

    a_idx = lax.broadcasted_iota(jnp.int32, (L, L), 0)
    b_idx = lax.broadcasted_iota(jnp.int32, (L, L), 1)
    ltri_incl = (a_idx >= b_idx).astype(jnp.float32)       # inclusive-cumsum mat
    causal = a_idx > b_idx                                  # strictly lower mask

    for s in range(n_sub):
        rows = pl.ds(s * L, L)
        r_all = r_ref[rows, :].astype(jnp.float32)          # (L, HG*N)
        k_all = k_ref[rows, :].astype(jnp.float32)
        v_all = v_ref[rows, :].astype(jnp.float32)
        w_all = w_ref[rows, :].astype(jnp.float32)          # decay logits, f32

        outs = []
        for h in range(HG):
            sl = slice(h * N, (h + 1) * N)
            r_h, k_h, v_h = r_all[:, sl], k_all[:, sl], v_all[:, sl]
            u_h = u_all[:, sl]                               # (1, N)
            g = -jnp.exp(w_all[:, sl])                       # (L, N) log-decay <=0
            gci = jnp.dot(ltri_incl, g,
                          preferred_element_type=jnp.float32)  # inclusive cumsum
            gce = gci - g                                       # exclusive cumsum
            g_last = gci[L - 1:L, :]                            # (1, N) total decay

            v_b = v_h.astype(jnp.bfloat16)
            # shared k-side factor (<= |k|): used by intra-chunk att AND state
            kd = k_h * jnp.exp(g_last - gci)
            kd_b = kd.astype(jnp.bfloat16)

            s_t = state_ref[h]                               # (N_v, N_k) state^T
            # inter-chunk: y1[a,j] = sum_i r[a,i]*exp(gce[a,i])*S[i,j]
            rq = (r_h * jnp.exp(gce)).astype(jnp.bfloat16)
            y_h = lax.dot_general(rq, s_t.astype(jnp.bfloat16),
                                  (((1,), (1,)), ((), ())),
                                  preferred_element_type=jnp.float32)  # (L, N)
            # intra-chunk via stabilized factorization (reference = g_last):
            #   A[a,b] = sum_i r*exp(gce[a]-g_last) * k*exp(g_last-gci[b])
            # Clamp keeps the r-side factor finite even for pathological decays
            # (causal entries are unaffected: their k-side factor underflows).
            rqi = (r_h * jnp.exp(jnp.minimum(gce - g_last, 80.0))
                   ).astype(jnp.bfloat16)
            att = lax.dot_general(rqi, kd_b, (((1,), (1,)), ((), ())),
                                  preferred_element_type=jnp.float32)  # (L, L)
            att = jnp.where(causal, att, 0.0)
            y_h = y_h + jnp.dot(att.astype(jnp.bfloat16), v_b,
                                preferred_element_type=jnp.float32)
            # current-step "u" bonus (diagonal)
            bonus = jnp.sum(r_h * u_h * k_h, axis=-1, keepdims=True)   # (L, 1)
            y_h = y_h + bonus * v_h
            outs.append(y_h)

            # state update: S' = prod(decay)*S + sum_b kd[b] (x) v[b]
            ds_t = lax.dot_general(v_b, kd_b, (((0,), (0,)), ((), ())),
                                   preferred_element_type=jnp.float32)  # (N_v,N_k)
            state_ref[h] = s_t * jnp.exp(g_last) + ds_t

        y_blk = jnp.concatenate(outs, axis=-1) if HG > 1 else outs[0]
        y_ref[rows, :] = y_blk.astype(y_ref.dtype)


def wkv6(r, k, v, w, u, H):
    """Chunked RWKV6 recurrence.  r/k/v: (B,T,C) bf16, w: (B,T,C) f32, u: (H,N)."""
    d = _tpu_defaults()
    B, T, C = r.shape
    N = C // H
    if N >= 128:
        assert N % 128 == 0 and C % N == 0
        base = N
    else:
        assert 128 % N == 0 and C % 128 == 0
        base = 128
    lane_blk = base
    for cand in (512, 384, 256):
        if cand % base == 0 and C % cand == 0:
            lane_blk = cand
            break
    HG = lane_blk // N

    if T % 32 == 0:
        L = 32
    elif T % 16 == 0:
        L = 16
    else:
        L = T
        # TODO(synk): pad T to a multiple of 32 upstream for long ragged
        # sequences; with L = T the (L, L) intra-chunk matrix is O(T^2).
    n_sub = 1
    for cand in (4, 2):
        if T % (L * cand) == 0 and HG * cand <= 16:
            n_sub = cand
            break
    TB = L * n_sub

    def _spec():
        return pl.BlockSpec((None, TB, lane_blk), lambda b, hg, c: (b, c, hg))

    u2 = u.reshape(1, C).astype(jnp.float32)
    return pl.pallas_call(
        functools.partial(_wkv6_kernel, HG, N, L, n_sub),
        grid=(B, C // lane_blk, T // TB),
        in_specs=[_spec(), _spec(), _spec(), _spec(),
                  pl.BlockSpec((1, lane_blk), lambda b, hg, c: (0, hg))],
        out_specs=_spec(),
        out_shape=jax.ShapeDtypeStruct((B, T, C), jnp.bfloat16),
        scratch_shapes=[pltpu.VMEM((HG, N, N), jnp.float32)],
        compiler_params=pltpu.CompilerParams(
            dimension_semantics=("parallel", "parallel", "arbitrary"),
            vmem_limit_bytes=d["vmem_limit"]),
    )(r, k, v, w, u2)


# ----------------------------------------------------------------------------
# Forward pass
# ----------------------------------------------------------------------------
def time_shift(x):
    # nn.ZeroPad2d((0, 0, 1, -1)) on (B, T, C): shift time by +1, zero at t=0
    return jnp.pad(x, ((0, 0), (1, 0), (0, 0)))[:, :-1, :]


def att_forward(x, p, a):
    B, T, C = x.shape
    A = a["dim_att"]
    H = A // a["head_size_a"]
    BT = B * T

    x2 = x.reshape(BT, C)                                   # bf16 (from LN)
    xx = (time_shift(x) - x).reshape(BT, C)                 # bf16

    # token-shift LoRA, stage 1: tanh((x + xx*maa_x) @ w1)  -> (BT, 5*Dm) bf16
    lo = mix_matmul(x2, xx, p["time_maa_x"], p["time_maa_w1"],
                    activation="tanh", out_dtype=jnp.bfloat16)
    Dm = p["time_maa_w1"].shape[1] // 5
    la = [lo[:, j * Dm:(j + 1) * Dm] for j in range(5)]      # order: w,k,v,r,g
    w2 = p["time_maa_w2"]

    # fused token-shift mix (+ per-mix LoRA) + projection
    r = mix_matmul(x2, xx, p["time_maa_r"], p["W_r"], lora=(la[3], w2[3]),
                   out_dtype=jnp.bfloat16)
    k = mix_matmul(x2, xx, p["time_maa_k"], p["W_k"], lora=(la[1], w2[1]),
                   out_dtype=jnp.bfloat16)
    v = mix_matmul(x2, xx, p["time_maa_v"], p["W_v"], lora=(la[2], w2[2]),
                   out_dtype=jnp.bfloat16)
    g = mix_matmul(x2, xx, p["time_maa_g"], p["W_g"], lora=(la[4], w2[4]),
                   activation="silu", out_dtype=jnp.bfloat16)
    dl = mix_matmul(x2, xx, p["time_maa_w"], p["time_decay_w1"],
                    lora=(la[0], w2[0]), activation="tanh",
                    out_dtype=jnp.bfloat16)
    # decay logits stay f32 into WKV (they go through exp/cumsum, not the MXU)
    w = matmul(dl, p["time_decay_w2"], bias=p["time_decay"],
               out_dtype=jnp.float32)                        # (BT, A)

    u = p["time_faaaa"].astype(jnp.bfloat16).astype(jnp.float32)   # (H, N)
    y = wkv6(r.reshape(B, T, A), k.reshape(B, T, A), v.reshape(B, T, A),
             w.reshape(B, T, A), u, H)                        # (B, T, A) bf16

    eps = 1e-5 * a["head_size_divisor"] ** 2
    gated = groupnorm_gate(y.reshape(BT, A), g, p["gn_w"], p["gn_b"], H,
                           eps=eps, out_dtype=jnp.bfloat16)
    out = matmul(gated, p["W_o"], out_dtype=jnp.float32)      # (BT, C)
    return out.reshape(B, T, C)


def ffn_forward(x, p):
    B, T, C = x.shape
    BT = B * T
    x2 = x.reshape(BT, C)
    xx = (time_shift(x) - x).reshape(BT, C)
    k = mix_matmul(x2, xx, p["time_maa_k_f"], p["W_kf"],
                   activation="relu_sq", out_dtype=jnp.bfloat16)
    rec = mix_matmul(x2, xx, p["time_maa_r_f"], p["W_rf"],
                     activation="sigmoid", out_dtype=jnp.bfloat16)
    out = matmul(k, p["W_vf"], gate=rec, out_dtype=jnp.float32)
    return out.reshape(B, T, C)


def block_forward(x, p, a):
    B, T, C = x.shape
    BT = B * T

    def ln(z, w, b, dtype):
        return layernorm(z.reshape(BT, C), w, b, out_dtype=dtype).reshape(B, T, C)

    if a["layer_id"] == 0:
        x = ln(x, p["ln0_w"], p["ln0_b"], jnp.float32)
    x = x + att_forward(ln(x, p["ln1_w"], p["ln1_b"], jnp.bfloat16), p, a)
    x = x + ffn_forward(ln(x, p["ln2_w"], p["ln2_b"], jnp.bfloat16), p)
    return x


# ----------------------------------------------------------------------------
# Deterministic parameter initialization (shapes from the module __init__)
# ----------------------------------------------------------------------------
def init_params(key, a):
    C, A, Fd = a["n_embd"], a["dim_att"], a["dim_ffn"]
    H, N = a["dim_att"] // a["head_size_a"], a["head_size_a"]
    L, lid = a["n_layer"], a["layer_id"]
    Dm, Dd = a["D_MIX_LORA"], a["D_DECAY_LORA"]

    r01 = lid / (L - 1)
    r1a0 = 1.0 - lid / L
    ddd = jnp.arange(C, dtype=jnp.float32) / C
    keys = jax.random.split(key, 12)

    def uni(k, shape, s=0.01):
        return jax.random.uniform(k, shape, jnp.float32, -s, s)

    def lin(k, n_in, n_out):
        return jax.random.normal(k, (n_in, n_out), jnp.float32) / math.sqrt(n_in)

    n = jnp.arange(A, dtype=jnp.float32)
    decay_speed = -6.0 + 5.0 * (n / (A - 1)) ** (0.7 + 1.3 * r01)
    zigzag = (((jnp.arange(A) + 1) % 3) - 1).astype(jnp.float32) * 0.1
    time_faaaa = (r01 * (1.0 - n / (A - 1)) + zigzag).reshape(H, N)

    return dict(
        ln0_w=jnp.ones(C), ln0_b=jnp.zeros(C),
        ln1_w=jnp.ones(C), ln1_b=jnp.zeros(C),
        ln2_w=jnp.ones(C), ln2_b=jnp.zeros(C),
        # attention (Tmix x060)
        time_maa_x=1.0 - ddd ** r1a0,
        time_maa_w=1.0 - ddd ** r1a0,
        time_maa_k=1.0 - ddd ** r1a0,
        time_maa_v=1.0 - (ddd ** r1a0 + 0.3 * r01),
        time_maa_r=1.0 - ddd ** (0.5 * r1a0),
        time_maa_g=1.0 - ddd ** (0.5 * r1a0),
        time_maa_w1=uni(keys[0], (C, Dm * 5)),     # module inits zeros; small
        time_maa_w2=uni(keys[1], (5, Dm, C)),      # values exercise the compute
        time_decay=decay_speed,
        time_decay_w1=uni(keys[2], (C, Dd)),
        time_decay_w2=uni(keys[3], (Dd, A)),
        time_faaaa=time_faaaa,
        W_r=lin(keys[4], C, A), W_k=lin(keys[5], C, A),
        W_v=lin(keys[6], C, A), W_g=lin(keys[7], C, A),
        W_o=lin(keys[8], A, C),
        gn_w=jnp.ones(A), gn_b=jnp.zeros(A),
        # FFN (CMix x060)
        time_maa_k_f=1.0 - ddd ** r1a0,
        time_maa_r_f=1.0 - ddd ** r1a0,
        W_kf=lin(keys[9], C, Fd),
        W_vf=lin(keys[10], Fd, C),
        W_rf=lin(keys[11], C, C),
    )


# ----------------------------------------------------------------------------
# Plain sequential/numpy references (validation only)
# ----------------------------------------------------------------------------
def wkv6_reference_np(r, k, v, w, u):
    r, k, v, w, u = (np.asarray(t, np.float32) for t in (r, k, v, w, u))
    B, T, C = r.shape
    H, N = u.shape
    y = np.zeros((B, T, C), np.float32)
    for b in range(B):
        for h in range(H):
            s = np.zeros((N, N), np.float32)
            sl = slice(h * N, (h + 1) * N)
            for t in range(T):
                rt, kt, vt, wt = r[b, t, sl], k[b, t, sl], v[b, t, sl], w[b, t, sl]
                kv = np.outer(kt, vt)
                y[b, t, sl] = rt @ (u[h][:, None] * kv + s)
                s = np.exp(-np.exp(wt))[:, None] * s + kv
    return y


def block_reference_np(x, p, a):
    """Pure float32 numpy reference of Block.forward (mirrors the torch code)."""
    x = np.asarray(x, np.float32)
    P = {k: np.asarray(v, np.float32) for k, v in p.items()}
    B, T, C = x.shape
    A = a["dim_att"]
    H = A // a["head_size_a"]
    Dm = P["time_maa_w1"].shape[1] // 5

    def lnorm(z, w, b):
        mu = z.mean(-1, keepdims=True)
        var = ((z - mu) ** 2).mean(-1, keepdims=True)
        return (z - mu) / np.sqrt(var + 1e-5) * w + b

    def tshift(z):
        out = np.zeros_like(z)
        out[:, 1:] = z[:, :-1]
        return out

    def att(xin):
        xx = tshift(xin) - xin
        xxx = xin + xx * P["time_maa_x"]
        lo = np.tanh(xxx.reshape(B * T, C) @ P["time_maa_w1"]).reshape(B * T, 5, Dm)
        mixes = [(lo[:, j] @ P["time_maa_w2"][j]).reshape(B, T, C) for j in range(5)]
        mw, mk, mv, mr, mg = mixes
        xw = xin + xx * (P["time_maa_w"] + mw)
        xk = xin + xx * (P["time_maa_k"] + mk)
        xv = xin + xx * (P["time_maa_v"] + mv)
        xr = xin + xx * (P["time_maa_r"] + mr)
        xg = xin + xx * (P["time_maa_g"] + mg)
        r = xr @ P["W_r"]
        k = xk @ P["W_k"]
        v = xv @ P["W_v"]
        gz = xg @ P["W_g"]
        g = gz / (1.0 + np.exp(-gz))
        ww = np.tanh(xw @ P["time_decay_w1"]) @ P["time_decay_w2"]
        w = P["time_decay"] + ww
        y = wkv6_reference_np(r, k, v, w, P["time_faaaa"])
        eps = 1e-5 * a["head_size_divisor"] ** 2
        y2 = y.reshape(B * T, H, A // H)
        mu = y2.mean(-1, keepdims=True)
        var = ((y2 - mu) ** 2).mean(-1, keepdims=True)
        yn = ((y2 - mu) / np.sqrt(var + eps)).reshape(B * T, A)
        yn = yn * P["gn_w"] + P["gn_b"]
        return ((yn * g.reshape(B * T, A)) @ P["W_o"]).reshape(B, T, C)

    def ffn(xin):
        xx = tshift(xin) - xin
        xk = xin + xx * P["time_maa_k_f"]
        xr = xin + xx * P["time_maa_r_f"]
        kk = np.maximum(xk @ P["W_kf"], 0.0) ** 2
        kv = kk @ P["W_vf"]
        return (1.0 / (1.0 + np.exp(-(xr @ P["W_rf"])))) * kv

    if a["layer_id"] == 0:
        x = lnorm(x, P["ln0_w"], P["ln0_b"])
    x = x + att(lnorm(x, P["ln1_w"], P["ln1_b"]))
    x = x + ffn(lnorm(x, P["ln2_w"], P["ln2_b"]))
    return x


# ----------------------------------------------------------------------------
if __name__ == "__main__":
    args = dict(
        n_embd=128, dim_att=128, dim_ffn=256,
        head_size_a=64, head_size_divisor=8,
        n_layer=2, layer_id=0,
        D_MIX_LORA=32, D_DECAY_LORA=64,
    )
    B, T = 2, 32

    key = jax.random.PRNGKey(0)
    pkey, xkey, wkey, mkey, gkey = jax.random.split(key, 5)
    params = init_params(pkey, args)
    x = jax.random.normal(xkey, (B, T, args["n_embd"]), jnp.float32)

    # --- unit check: mix_matmul VMEM-cache path (grid_i, grid_j, grid_k > 1) ---
    mkeys = jax.random.split(mkey, 6)
    Mt, Kt, Nt, Dmt = 128, 256, 256, 32
    xa = jax.random.normal(mkeys[0], (Mt, Kt), jnp.float32).astype(jnp.bfloat16)
    xxa = jax.random.normal(mkeys[1], (Mt, Kt), jnp.float32).astype(jnp.bfloat16)
    maa = 0.1 * jax.random.normal(mkeys[2], (Kt,), jnp.float32)
    la_t = (0.1 * jax.random.normal(mkeys[3], (Mt, Dmt))).astype(jnp.bfloat16)
    lb_t = 0.1 * jax.random.normal(mkeys[4], (Dmt, Kt), jnp.float32)
    wt = jax.random.normal(mkeys[5], (Kt, Nt), jnp.float32) / math.sqrt(Kt)
    out_mix = np.asarray(jax.block_until_ready(
        mix_matmul(xa, xxa, maa, wt, lora=(la_t, lb_t), activation="tanh",
                   out_dtype=jnp.float32, tm=64, tn=128, tk=128)), np.float32)
    m_ref = maa[None, :] + la_t.astype(jnp.float32) @ lb_t
    ref_mix = np.tanh(np.asarray(
        (xa.astype(jnp.float32) + xxa.astype(jnp.float32) * m_ref) @ wt, np.float32))
    assert np.allclose(out_mix, ref_mix, atol=3e-2, rtol=3e-2), \
        float(np.max(np.abs(out_mix - ref_mix)))

    # --- unit check: fused GroupNorm + gate ---
    gkeys = jax.random.split(gkey, 4)
    Ag, Hg = 128, 2
    yt = jax.random.normal(gkeys[0], (64, Ag), jnp.float32).astype(jnp.bfloat16)
    gt = jax.random.normal(gkeys[1], (64, Ag), jnp.float32).astype(jnp.bfloat16)
    gw = 1.0 + 0.1 * jax.random.normal(gkeys[2], (Ag,), jnp.float32)
    gb = 0.1 * jax.random.normal(gkeys[3], (Ag,), jnp.float32)
    eps_g = 1e-5 * args["head_size_divisor"] ** 2
    out_gn = np.asarray(jax.block_until_ready(
        groupnorm_gate(yt, gt, gw, gb, Hg, eps=eps_g)), np.float32)
    y_np = np.asarray(yt, np.float32).reshape(64, Hg, Ag // Hg)
    mu_np = y_np.mean(-1, keepdims=True)
    var_np = ((y_np - mu_np) ** 2).mean(-1, keepdims=True)
    yn_np = ((y_np - mu_np) / np.sqrt(var_np + eps_g)).reshape(64, Ag)
    ref_gn = (yn_np * np.asarray(gw) + np.asarray(gb)) * np.asarray(gt, np.float32)
    assert np.allclose(out_gn, ref_gn, atol=3e-2, rtol=3e-2), \
        float(np.max(np.abs(out_gn - ref_gn)))

    # --- standalone check of the chunked WKV6 kernel vs. a sequential scan ---
    H = args["dim_att"] // args["head_size_a"]
    N = args["head_size_a"]
    A = args["dim_att"]
    Tw = 256   # exercises multi-chunk + cross-grid-step state carry
    ks = jax.random.split(wkey, 5)
    rr = (0.5 * jax.random.normal(ks[0], (B, Tw, A))).astype(jnp.bfloat16)
    kk = (0.5 * jax.random.normal(ks[1], (B, Tw, A))).astype(jnp.bfloat16)
    vv = (0.5 * jax.random.normal(ks[2], (B, Tw, A))).astype(jnp.bfloat16)
    # realistic decay logits (w <= -0.2), as in RWKV-6 (time_decay in [-6,-1])
    ww = -(jnp.abs(jax.random.normal(ks[3], (B, Tw, A))) + 0.2).astype(jnp.float32)
    uu = (0.2 * jax.random.normal(ks[4], (H, N))
          ).astype(jnp.bfloat16).astype(jnp.float32)
    y_kernel = np.asarray(jax.block_until_ready(wkv6(rr, kk, vv, ww, uu, H)),
                          np.float32)
    y_ref = wkv6_reference_np(rr.astype(jnp.float32), kk.astype(jnp.float32),
                              vv.astype(jnp.float32), ww, uu)
    assert np.allclose(y_kernel, y_ref, rtol=5e-2, atol=1e-1), \
        float(np.max(np.abs(y_kernel - y_ref)))

    # --- full block forward vs. float32 numpy reference ---
    # TODO(synk): only the forward pass is implemented (the custom autograd
    # backward of WKV_6 is out of scope for this kernel).
    fwd = jax.jit(functools.partial(block_forward, a=args))
    y = jax.block_until_ready(fwd(x, params))
    assert y.shape == (B, T, args["n_embd"])
    assert bool(jnp.all(jnp.isfinite(y)))
    y_np = np.asarray(y, np.float32)
    y_ref_blk = block_reference_np(x, params, args)
    assert np.allclose(y_np, y_ref_blk, atol=2e-1, rtol=1e-1), \
        float(np.max(np.abs(y_np - y_ref_blk)))

    print("KERNEL_OK")
</pallas_src>

<mosaic_0001>
module attributes {stable_mosaic.version = 11 : i64} {
  func.func @_mix_mm_kernel(%arg0: i32, %arg1: i32, %arg2: i32, %arg3: memref<64x128xbf16, #tpu.memory_space<vmem>>, %arg4: memref<64x128xbf16, #tpu.memory_space<vmem>>, %arg5: memref<1x128xf32, #tpu.memory_space<vmem>>, %arg6: memref<64x32xbf16, #tpu.memory_space<vmem>>, %arg7: memref<32x128xbf16, #tpu.memory_space<vmem>>, %arg8: memref<128x128xbf16, #tpu.memory_space<vmem>>, %arg9: memref<64x128xf32, #tpu.memory_space<vmem>>, %arg10: memref<2x64x128xbf16, #tpu.memory_space<vmem>>, %arg11: memref<64x128xf32, #tpu.memory_space<vmem>>) attributes {dimension_semantics = [#tpu.dimension_semantics<parallel>, #tpu.dimension_semantics<arbitrary>, #tpu.dimension_semantics<arbitrary>], iteration_bounds = array<i64: 2, 2, 2>, scalar_prefetch = 0 : i64, scratch_operands = 2 : i64, tpu.core_type = #tpu.core_type<tc>, window_params = [{transform_indices = @transform_0, window_bounds = array<i64: 64, 128>}, {transform_indices = @transform_1, window_bounds = array<i64: 64, 128>}, {transform_indices = @transform_2, window_bounds = array<i64: 1, 128>}, {transform_indices = @transform_3, window_bounds = array<i64: 64, 32>}, {transform_indices = @transform_4, window_bounds = array<i64: 32, 128>}, {transform_indices = @transform_5, window_bounds = array<i64: 128, 128>}, {transform_indices = @transform_6, window_bounds = array<i64: 64, 128>}]} {
    %c0_i32 = arith.constant 0 : i32
    %0 = arith.cmpi eq, %arg2, %c0_i32 : i32
    %1 = arith.extui %0 : i1 to i32
    %c0_i32_0 = arith.constant 0 : i32
    %2 = arith.cmpi ne, %1, %c0_i32_0 : i32
    scf.if %2 {
      %cst_11 = arith.constant 0.000000e+00 : f32
      %17 = vector.broadcast %cst_11 : f32 to vector<64x128xf32>
      %c0_12 = arith.constant 0 : index
      %c0_13 = arith.constant 0 : index
      %18 = vector.load %arg11[%c0_12, %c0_13] : memref<64x128xf32, #tpu.memory_space<vmem>>, vector<64x128xf32>
      tpu.vector_store %arg11[%c0_12, %c0_13], %17 {strides = array<i32>} : memref<64x128xf32, #tpu.memory_space<vmem>>, vector<64x128xf32>,
    } else {
    }
    %c0_i32_1 = arith.constant 0 : i32
    %3 = arith.cmpi eq, %arg1, %c0_i32_1 : i32
    %4 = arith.extui %3 : i1 to i32
    %c0_i32_2 = arith.constant 0 : i32
    %5 = arith.cmpi ne, %4, %c0_i32_2 : i32
    scf.if %5 {
      %c0_11 = arith.constant 0 : index
      %c0_12 = arith.constant 0 : index
      %17 = vector.load %arg5[%c0_11, %c0_12] : memref<1x128xf32, #tpu.memory_space<vmem>>, vector<1x128xf32>
      %c0_13 = arith.constant 0 : index
      %c0_14 = arith.constant 0 : index
      %18 = vector.load %arg6[%c0_13, %c0_14] : memref<64x32xbf16, #tpu.memory_space<vmem>>, vector<64x32xbf16>
      %c0_15 = arith.constant 0 : index
      %c0_16 = arith.constant 0 : index
      %19 = vector.load %arg7[%c0_15, %c0_16] : memref<32x128xbf16, #tpu.memory_space<vmem>>, vector<32x128xbf16>
      %cst_17 = arith.constant dense<0.000000e+00> : vector<64x128xf32>
      %20 = tpu.matmul %18, %19, %cst_17 {dimension_numbers = #tpu.dot_dimension_numbers<[1], [0], [0], [1], [0, 0, 1, 1], [], []>} : vector<64x32xbf16>, vector<32x128xbf16>, vector<64x128xf32> -> vector<64x128xf32>
      %21 = vector.broadcast %17 : vector<1x128xf32> to vector<64x128xf32>
      %22 = arith.addf %21, %20 : vector<64x128xf32>
      %c0_18 = arith.constant 0 : index
      %c0_19 = arith.constant 0 : index
      %23 = vector.load %arg3[%c0_18, %c0_19] : memref<64x128xbf16, #tpu.memory_space<vmem>>, vector<64x128xbf16>
      %24 = arith.extf %23 : vector<64x128xbf16> to vector<64x128xf32>
      %c0_20 = arith.constant 0 : index
      %c0_21 = arith.constant 0 : index
      %25 = vector.load %arg4[%c0_20, %c0_21] : memref<64x128xbf16, #tpu.memory_space<vmem>>, vector<64x128xbf16>
      %26 = arith.extf %25 : vector<64x128xbf16> to vector<64x128xf32>
      %27 = arith.mulf %26, %22 : vector<64x128xf32>
      %28 = arith.addf %24, %27 : vector<64x128xf32>
      %29 = arith.truncf %28 : vector<64x128xf32> to vector<64x128xbf16>
      %30 = arith.index_cast %arg2 : i32 to index
      %c0_22 = arith.constant 0 : index
      %c0_23 = arith.constant 0 : index
      %31 = vector.load %arg10[%30, %c0_22, %c0_23] : memref<2x64x128xbf16, #tpu.memory_space<vmem>>, vector<1x64x128xbf16>
      %32 = vector.shape_cast %31 : vector<1x64x128xbf16> to vector<64x128xbf16>
      %33 = vector.shape_cast %29 : vector<64x128xbf16> to vector<1x64x128xbf16>
      tpu.vector_store %arg10[%30, %c0_22, %c0_23], %33 {strides = array<i32>} : memref<2x64x128xbf16, #tpu.memory_space<vmem>>, vector<1x64x128xbf16>,
    } else {
    }
    %6 = arith.index_cast %arg2 : i32 to index
    %c0 = arith.constant 0 : index
    %c0_3 = arith.constant 0 : index
    %7 = vector.load %arg10[%6, %c0, %c0_3] : memref<2x64x128xbf16, #tpu.memory_space<vmem>>, vector<1x64x128xbf16>
    %8 = vector.shape_cast %7 : vector<1x64x128xbf16> to vector<64x128xbf16>
    %c0_4 = arith.constant 0 : index
    %c0_5 = arith.constant 0 : index
    %9 = vector.load %arg11[%c0_4, %c0_5] : memref<64x128xf32, #tpu.memory_space<vmem>>, vector<64x128xf32>
    %c0_6 = arith.constant 0 : index
    %c0_7 = arith.constant 0 : index
    %10 = vector.load %arg8[%c0_6, %c0_7] : memref<128x128xbf16, #tpu.memory_space<vmem>>, vector<128x128xbf16>
    %cst = arith.constant dense<0.000000e+00> : vector<64x128xf32>
    %11 = tpu.matmul %8, %10, %cst {dimension_numbers = #tpu.dot_dimension_numbers<[1], [0], [0], [1], [0, 0, 1, 1], [], []>} : vector<64x128xbf16>, vector<128x128xbf16>, vector<64x128xf32> -> vector<64x128xf32>
    %12 = arith.addf %9, %11 : vector<64x128xf32>
    %c0_8 = arith.constant 0 : index
    %c0_9 = arith.constant 0 : index
    %13 = vector.load %arg11[%c0_8, %c0_9] : memref<64x128xf32, #tpu.memory_space<vmem>>, vector<64x128xf32>
    tpu.vector_store %arg11[%c0_8, %c0_9], %12 {strides = array<i32>} : memref<64x128xf32, #tpu.memory_space<vmem>>, vector<64x128xf32>,
    %c1_i32 = arith.constant 1 : i32
    %14 = arith.cmpi eq, %arg2, %c1_i32 : i32
    %15 = arith.extui %14 : i1 to i32
    %c0_i32_10 = arith.constant 0 : i32
    %16 = arith.cmpi ne, %15, %c0_i32_10 : i32
    scf.if %16 {
      %c0_11 = arith.constant 0 : index
      %c0_12 = arith.constant 0 : index
      %17 = vector.load %arg11[%c0_11, %c0_12] : memref<64x128xf32, #tpu.memory_space<vmem>>, vector<64x128xf32>
      %18 = math.tanh %17 : vector<64x128xf32>
      %c0_13 = arith.constant 0 : index
      %c0_14 = arith.constant 0 : index
      %19 = vector.load %arg9[%c0_13, %c0_14] : memref<64x128xf32, #tpu.memory_space<vmem>>, vector<64x128xf32>
      tpu.vector_store %arg9[%c0_13, %c0_14], %18 {strides = array<i32>} : memref<64x128xf32, #tpu.memory_space<vmem>>, vector<64x128xf32>,
    } else {
    }
    return
  }
  func.func @transform_0(%arg0: i32, %arg1: i32, %arg2: i32) -> (i32, i32) {
    %c0_i32 = arith.constant 0 : i32
    return %arg0, %arg2 : i32, i32
  }
  func.func @transform_1(%arg0: i32, %arg1: i32, %arg2: i32) -> (i32, i32) {
    %c0_i32 = arith.constant 0 : i32
    return %arg0, %arg2 : i32, i32
  }
  func.func @transform_2(%arg0: i32, %arg1: i32, %arg2: i32) -> (i32, i32) {
    %c0_i32 = arith.constant 0 : i32
    %c0_i32_0 = arith.constant 0 : i32
    return %c0_i32, %arg2 : i32, i32
  }
  func.func @transform_3(%arg0: i32, %arg1: i32, %arg2: i32) -> (i32, i32) {
    %c0_i32 = arith.constant 0 : i32
    %c0_i32_0 = arith.constant 0 : i32
    return %arg0, %c0_i32 : i32, i32
  }
  func.func @transform_4(%arg0: i32, %arg1: i32, %arg2: i32) -> (i32, i32) {
    %c0_i32 = arith.constant 0 : i32
    %c0_i32_0 = arith.constant 0 : i32
    return %c0_i32, %arg2 : i32, i32
  }
  func.func @transform_5(%arg0: i32, %arg1: i32, %arg2: i32) -> (i32, i32) {
    %c0_i32 = arith.constant 0 : i32
    return %arg2, %arg1 : i32, i32
  }
  func.func @transform_6(%arg0: i32, %arg1: i32, %arg2: i32) -> (i32, i32) {
    %c0_i32 = arith.constant 0 : i32
    return %arg0, %arg1 : i32, i32
  }
}

</mosaic_0001>

<bundles_post_ra>
// kernel: tpu_custom_call.1
= control target key start
LH: loop header
LB: loop body
LE: loop exit
PB: predicated region body
PF: predicated region fallthrough
CT: control target
= control target key end

     0   :  { %s2275_s0 = inlined_call_operand.hbm [shape: bf16[128,256], index: 0, kind: input, shape index: {}]   ;;  %s2276_s1 = inlined_call_operand.hbm [shape: bf16[128,256], index: 1, kind: input, shape index: {}]   ;;  %s2277_s2 = inlined_call_operand.vmem [shape: f32[1,256], index: 2, kind: input, shape index: {}]   ;;  %s2278_s3 = inlined_call_operand.vmem [shape: bf16[128,32], index: 3, kind: input, shape index: {}]   ;;  %s2279_s4 = inlined_call_operand.vmem [shape: bf16[32,256], index: 4, kind: input, shape index: {}]   ;;  %s2280_s5 = inlined_call_operand.hbm [shape: bf16[256,256], index: 5, kind: input, shape index: {}]   ;;  %s2281_s6 = inlined_call_operand.hbm [shape: f32[128,256], index: 6, kind: output, shape index: {}]  }
   0x1   :  { %2307 = sst [smem:[#allocation36_spill]] %s2275_s0 }
   0x2   :  { %2308 = sst [smem:[#allocation37_spill]] %s2277_s2 }
   0x3   :  { %2309 = sst [smem:[#allocation38_spill]] %s2278_s3 }
   0x4   :  { %2310 = sst [smem:[#allocation39_spill]] %s2281_s6 }
   0x5   :  { %11 = vsyncpa [#allocation5], 0 }
   0x6   :  { %13 = vsyncpa [#allocation5 + $0x1], 0 }
   0x7   :  { %14 = vsyncpa [#allocation8], 0 }
   0x8   :  { %16 = vsyncpa [#allocation8 + $0x1], 0 }
   0x9   :  { %17 = vsyncpa [#allocation6], 0 }
   0xa   :  { %19 = vsyncpa [#allocation6 + $0x1], 0  ;;  %s1782_s21 = smov 0   ;;  %s1784_s22 = smov 0  }
   0xb   :  { %s1786_s23 = smov 0   ;;  %s1788_s24 = smov 0  }
   0xc   :  { %s1790_s25 = smov 0   ;;  %s1792_s26 = smov 0  }
   0xd   :  { %s1794_s27 = smov 0   ;;  %s1796_s28 = smov 0  }
   0xe   :  { %s1798_s29 = smov 0   ;;  %s1800_s30 = smov 0  }
   0xf   :  { %s1802_s7 = smov 0   ;;  %s1804_s8 = smov 0  }
  0x10   :  { %s1806_s9 = smov 0   ;;  %s1808_s10 = smov 0  }
  0x11   :  { %s1810_s11 = smov 0   ;;  %s1812_s12 = smov 0  }
  0x12   :  { %s1814_s13 = smov 0   ;;  %s1816_s14 = smov 0  }
  0x13 LB: > { %2311 = sst [smem:[#allocation16_spill]] %s1666_s21  ;;  %s1871_s15 = sadd.s32 4294967295, %s1734_s14   ;;  %s1734_s14 = sphi %s1816_s14, %s25_s14   ;;  %s1730_s13 = sphi %s1814_s13, %s2391_s13   ;;  %s1726_s12 = sphi %s1812_s12, %s2390_s12   ;;  %s1722_s11 = sphi %s1810_s11, %s2389_s11   ;;  %s1718_s10 = sphi %s1808_s10, %s2388_s10   ;;  %s1714_s9 = sphi %s1806_s9, %s2387_s9   ;;  %s1710_s8 = sphi %s1804_s8, %s2386_s8   ;;  %s1706_s7 = sphi %s1802_s7, %s2373_s7   ;;  %s1702_s30 = sphi %s1800_s30, %s2385_s30   ;;  %s1698_s29 = sphi %s1798_s29, %s2384_s29   ;;  %s1694_s28 = sphi %s1796_s28, %s2383_s28   ;;  %s1690_s27 = sphi %s1794_s27, %s2382_s27   ;;  %s1686_s26 = sphi %s1792_s26, %s2381_s26   ;;  %s1682_s25 = sphi %s1790_s25, %s2380_s25   ;;  %s1678_s24 = sphi %s1788_s24, %s2379_s24   ;;  %s1674_s23 = sphi %s1786_s23, %s2369_s23   ;;  %s1670_s22 = sphi %s1784_s22, %s2368_s22   ;;  %s1666_s21 = sphi %s1782_s21, %s2367_s21  }
  0x14   : > { %2312 = sst [smem:[#allocation17_spill]] %s1670_s22  ;;  %s37_s17 = sadd.s32 1, %s1722_s11 }
  0x15   : > { %2313 = sst [smem:[#allocation18_spill]] %s1674_s23  ;;  %s40_s18 = sadd.s32 1, %s1726_s12 }
  0x16   : > { %2314 = sst [smem:[#allocation19_spill]] %s1690_s27  ;;  %p38_p0 = scmp.ge.s32.totalorder %s37_s17, 2 }
  0x17   : > { %2315 = sst [smem:[#allocation20_spill]] %s1706_s7  ;;  %s44_s19 = sadd.s32 1, %s1730_s13 }
  0x18   : > { %2316 = sst [smem:[#allocation21_spill]] %s1710_s8  ;;  %s53_s20 = sadd.s32 1, %s1706_s7 }
  0x19   : > { %2317 = sst [smem:[#allocation22_spill]] %s1714_s9  ;;  %p60_p1 = scmp.ne.s32.totalorder %s1706_s7, %s1702_s30 }
  0x1a   : > { %2318 = sst [smem:[#allocation23_spill]] %s1718_s10  ;;  %s2393_s17 = smov (%p38_p0, %s37_s17), 0 }
  0x1b   : > { %2319 = sst [smem:[#allocation24_spill]] %s1730_s13  ;;  %s2395_s18 = smov (!%p38_p0, %s40_s18), %s1726_s12 }
  0x1c   : > { %2320 = sst [smem:[#allocation25_spill]] %s2393_s17  ;;  %s49_s6 = ssub.s32 %s1722_s11, %s2393_s17 }
  0x1d   : > { %p61_p2 = scmp.eq.s32.totalorder %s1734_s14, 0  ;;  %p42_p3 = scmp.ge.s32.totalorder %s2395_s18, 2 }
  0x1e   : > { %p66_p4 = scmp.ne.s32.totalorder %s1702_s30, %s1698_s29  ;;  %p67_p6 = scmp.eq.s32.totalorder %s1871_s15, 0 }
  0x1f   : > { %p1889_p5 = por %p61_p2, %p60_p1  ;;  %s2397_s18 = smov (%p42_p3, %s2395_s18), 0 }
  0x20   : > { %2322 = sst [smem:[#allocation26_spill]] %s2397_s18  ;;  %s2399_s19 = smov (!%p42_p3, %s44_s19), %s1730_s13 }
  0x21   : > { %p1899_p7 = por %p67_p6, %p66_p4  ;;  %p157_p8 = scmp.eq.s32.totalorder %s49_s6, 0 }
  0x22   : > { %p46_p9 = scmp.ge.s32.totalorder %s2399_s19, 2  ;;  %s159_s29 = sadd.s32 1, %s1694_s28 }
  0x23   : > { %s2323_s17 = scalar_select %p1899_p7, 1, 0 }
  0x24   : > { %s1905_s9 = scalar_select %p157_p8, %s1694_s28, %s159_s29  }
  0x25   : > { %2324 = sst [smem:[#allocation27_spill]] %s2323_s17  ;;  %s2401_s19 = smov (%p46_p9, %s2399_s19), 0 }
  0x26   : > { %2325 = sst [smem:[#allocation28_spill]] %s1905_s9  ;;  %p166_p10 = scmp.ne.s32.totalorder %s1694_s28, %s1690_s27 }
  0x27   : > { %2326 = sst [smem:[#allocation29_spill]] %s2401_s19  ;;  %s183_s3 = ssub.s32 %s1726_s12, %s2397_s18 }
  0x28   : > { %s48_s2 = ssub.s32 %s1730_s13, %s2401_s19  ;;  %s184_s10 = sor.u32 %s183_s3, %s49_s6 }
  0x29   : > { %s50_s8 = sor.u32 %s49_s6, %s48_s2  ;;  %p1917_p11 = por %p166_p10, %p61_p2 }
  0x2a   : > { %p51_p12 = scmp.eq.s32.totalorder %s50_s8, 0  ;;  %p185_p13 = scmp.eq.s32.totalorder %s184_s10, 0 }
  0x2b   : > { %s187_s29 = sadd.s32 1, %s1686_s26  ;;  %p194_p0 = scmp.ne.s32.totalorder %s1686_s26, %s1682_s25 }
  0x2c   : > { %s1925_s18 = scalar_select %p51_p12, %s1706_s7, %s53_s20  }
  0x2d   : > { %s1928_s19 = scalar_select %p185_p13, %s1686_s26, %s187_s29  }
  0x2e   : > { %2328 = sst [smem:[#allocation30_spill]] %s1925_s18  ;;  %p1932_p1 = por %p194_p0, %p61_p2 }
  0x2f   : > { %2329 = sst [smem:[#allocation31_spill]] %s1928_s19  ;;  %p200_p3 = scmp.ne.s32.totalorder %s1682_s25, %s1678_s24 }
  0x30   : > { %s2330_s6 = scalar_select %p1932_p1, 1, 0 }
  0x31   : > { %s212_s9 = sor.u32 %s183_s3, %s48_s2  ;;  %s215_s27 = sadd.s32 1, %s1674_s23 }
  0x32   : > { %p1941_p4 = por %p200_p3, %p67_p6  ;;  %p213_p8 = scmp.eq.s32.totalorder %s212_s9, 0 }
  0x33   : > { %p225_p9 = scmp.ne.s32.totalorder %s1674_s23, %s1670_s22  ;;  %p226_p10 = scmp.eq.s32.totalorder %s1871_s15, 7 }
  0x34   : > { %s2331_s8 = scalar_select %p1941_p4, 1, 0 }
  0x35   : > { %s1949_s10 = scalar_select %p213_p8, %s1674_s23, %s215_s27  }
  0x36   : > { %2332 = sst [smem:[#allocation32_spill]] %s2331_s8  ;;  %p1951_p12 = por %p226_p10, %p225_p9 }
  0x37   : > { %2333 = sst [smem:[#allocation33_spill]] %s1949_s10  ;;  %p231_p2 = scmp.ne.s32.totalorder %s1670_s22, %s1666_s21 }
  0x38   : > { %s2334_s20 = scalar_select %p1951_p12, 1, 0 }
  0x39   : > { %s2336_s29 = sadd.s32 4294967294, %s1734_s14   ;;  %p1097_p6 = scmp.ge.s32.totalorder %s1734_s14, 8 }
  0x3a   : > { %2335 = sst [smem:[#allocation34_spill]] %s2334_s20  ;;  %p232_p13 = scmp.eq.s32.totalorder %s2336_s29, 7 }
  0x3b   : > { %248 = sbr.rel (%p1097_p6) target bundleno = 152 (0x98), region = 16  ;;  %s252_s3 = sand.u32 (!%p1097_p6), 1, %s1706_s7  }
  0x3c   : > { %p1959_p0 = por %p232_p13, %p231_p2  ;;  %s1152_s24 = sshll.u32 (!%p1097_p6), %s1730_s13, 4 }
  0x3d   : > { %s1966_s27 = sshll.u32 (!%p1097_p6), %s252_s3, 5  ;;  %s1969_s9 = sadd.s32 (!%p1097_p6), %s1722_s11, %s1152_s24 }
  0x3e   : > { %s2337_s2 = scalar_select %p1959_p0, 1, 0 }
  0x3f   : > { %s2296_s29 = sshll.u32 (!%p1097_p6), %s1969_s9, 6  ;;  %s256_s18 = scalar_lea.vmem (!%p1097_p6), [#allocation4], %s1966_s27 }
  0x40   : > { %2338 = sst [smem:[#allocation35_spill]] %s2337_s2  ;;  %s265_s19 = sshll.u32 (!%p1097_p6), %s256_s18, 4  ;;  %s1980_s19 = int_to_ptr.vmem [resolvable:$true] %s265_s19 }
  0x41   : > { %s2339_s0 = sld [smem:[#allocation36_spill]] (!%p1097_p6)  ;;  %s1983_s24 = scalar_lea.sflag (!%p1097_p6), [#allocation5], %s252_s3 }
  0x47   : > { %s1978_s2 = scalar_lea.hbm %s2339_s0, %s2296_s29  ;;  %s1468_s23 = scalar_lea.hbm %s2339_s0, 2048 }
  0x48   : > { %s1464_s7 = scalar_lea.hbm %s1978_s2, 512  ;;  %p1469_p10 = scmp.lt.u32.totalorder %s1978_s2, %s2339_s0 }
  0x49   : > { %p1465_p3 = scmp.ne.s32.totalorder %s1978_s2, %s1464_s7  ;;  %p1470_p2 = scmp.lt.u32.totalorder %s1468_s23, %s1464_s7 }
  0x4a   : > { %p1472_p6 = scmp.lt.u32.totalorder %s1464_s7, %s1978_s2 }
  0x4b   : > { %p1466_p8 = pnand %p1465_p3, %p1889_p5  ;;  %p1471_p13 = por %p1470_p2, %p1469_p10 }
  0x4d   : > { %p1467_p9 = pneg %p1466_p8  ;;  %p1473_p0 = por %p1472_p6, %p1471_p13 }
  0x4f   : > { %p1474_p12 = pnand %p1473_p0, %p1467_p9 }
  0x51   : > { %1477 = shalt.err (!%p1474_p12)
}
  0x52   : > { %s1478_s3 = scalar_lea.vmem %s1980_s19, 512  ;;  %s1736_s21 = smov [#allocation4]  }
  0x53   : > { %p1479_p3 = scmp.ne.s32.totalorder %s1980_s19, %s1478_s3  ;;  %s1482_s18 = sshll.u32 %s1736_s21, 4  ;;  %s1483_s18 = int_to_ptr.vmem [resolvable:$false] %s1482_s18 }
  0x54   : > { %s1484_s29 = scalar_lea.vmem %s1483_s18, 1024  ;;  %p1485_p7 = scmp.lt.s32.totalorder %s1980_s19, %s1483_s18 }
  0x55   : > { %p1480_p8 = pnand %p1479_p3, %p1889_p5  ;;  %p1486_p1 = scmp.lt.s32.totalorder %s1484_s29, %s1478_s3 }
  0x57   : > { %p1481_p4 = pneg %p1480_p8  ;;  %p1487_p10 = por %p1486_p1, %p1485_p7 }
  0x59   : > { %p1488_p2 = pnand %p1487_p10, %p1481_p4 }
  0x5b   : > { %1491 = shalt.err (!%p1488_p2)
}
  0x5c   : > { %s1737_s7 = smov 128   ;;  %s1738_s23 = smov 64  }
  0x5d   : > { %s1739_s10 = smov 4   ;;  %s2340_s3 = sshll.u32 %s1969_s9, 6 }
  0x5e   : > { %1270 = dma.hbm_to_vmem [thread:$0]  (%p1889_p5), %s1978_s2, 512, %s1980_s19, %s1983_s24, %s1737_s7, %s1738_s23, %s1739_s10  }
  0x5f   : > { %s2015_s29 = scalar_lea.hbm %s2276_s1, %s2340_s3  ;;  %s279_s13 = scalar_lea.vmem [#allocation7], %s1966_s27 }
  0x60   : > { %s288_s0 = sshll.u32 %s279_s13, 4  ;;  %s2341_s20 = sand.u32 1, %s1734_s14   ;;  %s2018_s0 = int_to_ptr.vmem [resolvable:$true] %s288_s0 }
  0x61   : > { %s2022_s22 = scalar_lea.sflag [#allocation8], %s2341_s20  ;;  %s1492_s8 = scalar_lea.hbm %s2015_s29, 512 }
  0x62   : > { %p1493_p7 = scmp.ne.s32.totalorder %s2015_s29, %s1492_s8  ;;  %s1496_s9 = scalar_lea.hbm %s2276_s1, 2048 }
  0x63   : > { %p1497_p12 = scmp.lt.u32.totalorder %s2015_s29, %s2276_s1  ;;  %p1498_p0 = scmp.lt.u32.totalorder %s1496_s9, %s1492_s8 }
  0x64   : > { %p1494_p1 = pnand %p1493_p7, %p1889_p5  ;;  %p1500_p13 = scmp.lt.u32.totalorder %s1492_s8, %s2015_s29 }
  0x65   : > { %p1499_p9 = por %p1498_p0, %p1497_p12 }
  0x66   : > { %p1495_p4 = pneg %p1494_p1 }
  0x67   : > { %p1501_p6 = por %p1500_p13, %p1499_p9 }
  0x69   : > { %p1502_p3 = pnand %p1501_p6, %p1495_p4 }
  0x6b   : > { %1505 = shalt.err (!%p1502_p3)
}
  0x6c   : > { %s1506_s13 = scalar_lea.vmem %s2018_s0, 512  ;;  %s1740_s20 = smov [#allocation7]  }
  0x6d   : > { %p1507_p8 = scmp.ne.s32.totalorder %s2018_s0, %s1506_s13  ;;  %s1510_s27 = sshll.u32 %s1740_s20, 4  ;;  %s1511_s27 = int_to_ptr.vmem [resolvable:$false] %s1510_s27 }
  0x6e   : > { %s1512_s21 = scalar_lea.vmem %s1511_s27, 1024  ;;  %p1513_p7 = scmp.lt.s32.totalorder %s2018_s0, %s1511_s27 }
  0x6f   : > { %p1508_p10 = pnand %p1507_p8, %p1889_p5  ;;  %p1514_p1 = scmp.lt.s32.totalorder %s1512_s21, %s1506_s13 }
  0x71   : > { %p1509_p2 = pneg %p1508_p10  ;;  %p1515_p12 = por %p1514_p1, %p1513_p7 }
  0x73   : > { %p1516_p0 = pnand %p1515_p12, %p1509_p2 }
  0x75   : > { %1519 = shalt.err (!%p1516_p0)
}
  0x76   : > { %1271 = dma.hbm_to_vmem [thread:$0]  (%p1889_p5), %s2015_s29, 512, %s2018_s0, %s2022_s22, %s1737_s7, %s1738_s23, %s1739_s10  }
  0x77   : > { %312 = sbr.rel (!%p1917_p11) target bundleno = 126 (0x7e), region = 36  ;;  %s314_s8 = sand.u32 (%p1917_p11), 1, %s1694_s28  }
  0x78   : > { %s1107_s18 = sshll.u32 (%p1917_p11), %s1722_s11, 2  ;;  %s1106_s19 = sshll.u32 (%p1917_p11), %s314_s8, 4 }
  0x79   : > { %s318_s24 = scalar_lea.vmem (%p1917_p11), %s2279_s4, %s1107_s18  ;;  %s316_s16 = scalar_lea.vmem (%p1917_p11), [#allocation9], %s1106_s19 }
  0x7a   : > { %v334_v0 = vld [vmem:[%s318_s24] sm:$0xf] (%p1917_p11)  ;;  %v336_v1 = vld [vmem:[%s318_s24 + $0x8] sm:$0xf] (%p1917_p11)  ;;  %v338_v2 = vld [vmem:[%s318_s24 + $0x10] sm:$0xf] (%p1917_p11) }
  0x7b   : > { %335 = vst [vmem:[%s316_s16] sm:$0xf] (%p1917_p11), %v334_v0  ;;  %337 = vst [vmem:[%s316_s16 + $0x4] sm:$0xf] (%p1917_p11), %v336_v1  ;;  %v340_v3 = vld [vmem:[%s318_s24 + $0x18] sm:$0xf] (%p1917_p11) }
  0x7c   : > { %339 = vst [vmem:[%s316_s16 + $0x8] sm:$0xf] (%p1917_p11), %v338_v2  ;;  %341 = vst [vmem:[%s316_s16 + $0xc] sm:$0xf] (%p1917_p11), %v340_v3 }
  0x7e PF: > { %s375_s0 = sand.u32 1, %s1686_s26   ;;  %s1154_s17 = sshll.u32 %s1722_s11, 5 }
  0x7f   : > { %s1108_s29 = sshll.u32 %s375_s0, 6  ;;  %s383_s3 = sadd.s32 %s1726_s12, %s1154_s17 }
  0x80   : > { %s1111_s13 = sshll.u32 %s383_s3, 6  ;;  %s377_s8 = scalar_lea.vmem [#allocation10], %s1108_s29 }
  0x81   : > { %s2062_s21 = scalar_lea.hbm %s2280_s5, %s1111_s13  ;;  %s386_s18 = sshll.u32 %s377_s8, 4  ;;  %s2064_s18 = int_to_ptr.vmem [resolvable:$true] %s386_s18 }
  0x82   : > { %s1520_s19 = scalar_lea.hbm %s2062_s21, 1024  ;;  %p2342_p11 = scmp.ne.s32.totalorder %s2330_s6, 0 }
  0x83   : > { %p1521_p5 = scmp.ne.s32.totalorder %s2062_s21, %s1520_s19  ;;  %s1524_s24 = scalar_lea.hbm %s2280_s5, 4096 }
  0x84   : > { %p1525_p13 = scmp.lt.u32.totalorder %s2062_s21, %s2280_s5  ;;  %p1526_p6 = scmp.lt.u32.totalorder %s1524_s24, %s1520_s19 }
  0x85   : > { %p1522_p4 = pnand %p1521_p5, %p2342_p11  ;;  %p1528_p8 = scmp.lt.u32.totalorder %s1520_s19, %s2062_s21 }
  0x86   : > { %p1527_p3 = por %p1526_p6, %p1525_p13 }
  0x87   : > { %p1523_p9 = pneg %p1522_p4 }
  0x88   : > { %p1529_p10 = por %p1528_p8, %p1527_p3 }
  0x8a   : > { %p1530_p2 = pnand %p1529_p10, %p1523_p9 }
  0x8c   : > { %1533 = shalt.err (!%p1530_p2)
}
  0x8d   : > { %s1534_s17 = scalar_lea.vmem %s2064_s18, 1024  ;;  %s1741_s29 = smov [#allocation10]  }
  0x8e   : > { %p1535_p7 = scmp.ne.s32.totalorder %s2064_s18, %s1534_s17  ;;  %s1538_s3 = sshll.u32 %s1741_s29, 4  ;;  %s1539_s3 = int_to_ptr.vmem [resolvable:$false] %s1538_s3 }
  0x8f   : > { %s1540_s13 = scalar_lea.vmem %s1539_s3, 2048  ;;  %p1541_p0 = scmp.lt.s32.totalorder %s2064_s18, %s1539_s3 }
  0x90   : > { %p1536_p1 = pnand %p1535_p7, %p2342_p11  ;;  %p1542_p5 = scmp.lt.s32.totalorder %s1540_s13, %s1534_s17 }
  0x92   : > { %p1537_p12 = pneg %p1536_p1  ;;  %p1543_p4 = por %p1542_p5, %p1541_p0 }
  0x94   : > { %p1544_p13 = pnand %p1543_p4, %p1537_p12 }
  0x96   : > { %1547 = shalt.err (!%p1544_p13)
}
  0x97   : > { %1272 = dma.hbm_to_vmem [thread:$0]  (%p2342_p11), %s2062_s21, 1024, %s2064_s18, %s2022_s22, %s1737_s7, %s1738_s23, %s1739_s10  }
  0x98 PF: > { %p1112_p9 = scmp.ge.s32.totalorder %s1734_s14, 1  ;;  %p394_p6 = scmp.lt.s32.totalorder %s1734_s14, 9 }
  0x9a   : > { %p395_p3 = pnand %p1112_p9, %p394_p6 }
  0x9b   : > { %s2343_s20 = sld [smem:[#allocation27_spill]] (!%p395_p3)  ;;  %s400_s27 = sand.u32 (!%p395_p3), 1, %s1702_s30  }
  0x9c   : > { %398 = sbr.rel (%p395_p3) target bundleno = 742 (0x2e6), region = 81  ;;  %s1113_s8 = sshll.u32 (!%p395_p3), %s400_s27, 5 }
  0x9d   : > { %s401_s19 = scalar_lea.sflag (!%p395_p3), [#allocation5], %s400_s27  ;;  %s2094_s6 = scalar_lea.vmem (!%p395_p3), [#allocation4], %s1113_s8 }
  0xa1   : > { %p2344_p8 = scmp.ne.s32.totalorder (!%p395_p3), %s2343_s20, 0 }
  0xa3   : > { %1649 = dma.done.wait (%p2344_p8), %s401_s19, 512  }
  0xa4   : > { %1651 = vsyncadd (%p2344_p8), %s401_s19, 4294966784  ;;  %s409_s22 = sand.u32 1, %s1871_s15   ;;  %s2101_s23 = scalar_lea.vmem [#allocation7], %s1113_s8 }
  0xa5   : > { %s410_s7 = scalar_lea.sflag [#allocation8], %s409_s22 }
  0xa6   : > { %1653 = dma.done.wait (%p2344_p8), %s410_s7, 512  }
  0xa7   : > { %1655 = vsyncadd (%p2344_p8), %s410_s7, 4294966784  ;;  %s2345_s10 = sld [smem:[#allocation19_spill]]  ;;  %s2346_s21 = sld [smem:[#allocation32_spill]] }
  0xa8   : > { %s427_s2 = sand.u32 1, %s1682_s25  }
  0xa9   : > { %s1116_s24 = sshll.u32 %s427_s2, 6 }
  0xaa   : > { %s2112_s0 = scalar_lea.vmem [#allocation10], %s1116_s24 }
  0xad   : > { %s419_s18 = sand.u32 1, %s2345_s10   ;;  %p2347_p11 = scmp.ne.s32.totalorder %s2346_s21, 0 }
  0xae   : > { %s2109_s9 = sshll.u32 %s419_s18, 4 }
  0xaf   : > { %s421_s16 = scalar_lea.vmem [#allocation9], %s2109_s9 }
  0xb0   : > { %1657 = dma.done.wait (%p2347_p11), %s410_s7, 1024  }
  0xb1   : > { %1659 = vsyncadd (%p2347_p11), %s410_s7, 4294966272  ;;  %s2348_s15 = sld [smem:[#allocation17_spill]]  ;;  %s2349_s17 = sld [smem:[#allocation21_spill]] }
  0xb2   : > { %s2350_s29 = sld [smem:[#allocation23_spill]]  ;;  %s2351_s22 = sld [smem:[#allocation37_spill]] }
  0xb3   : > { %s2352_s2 = sld [smem:[#allocation38_spill]] }
  0xb7   : > { %s477_s3 = sand.u32 1, %s2348_s15   ;;  %p482_p10 = scmp.lt.s32.totalorder %s2349_s17, 1 }
  0xb8   : > { %s1117_s13 = sshll.u32 %s477_s3, 6  ;;  %s1118_s20 = sshll.u32 %s2350_s29, 3 }
  0xb9   : > { %p486_p2 = scmp.lt.s32.totalorder %s1118_s20, 15  ;;  %s2133_s24 = scalar_lea.vmem [#allocation11], %s1117_s13 }
  0xba   : > { %s2124_s27 = scalar_select %p482_p10, %s2349_s17, 1 }
  0xbb   : > { %s2403_s20 = smov (!%p486_p2, %s1118_s20), 15  ;;  %p1120_p7 = scmp.ne.s32.totalorder %s2349_s17, 0 }
  0xbc   : > { %s484_s10 = scalar_lea.vmem %s2351_s22, %s2124_s27  ;;  %s1119_s7 = sshll.u32 %s2403_s20, 2  ;;  %v1742_v4 = vmov (!%p1120_p7), 0.0  }
  0xbd   : > { %s489_s9 = scalar_lea.vmem %s2352_s2, %s1119_s7  ;;  %497 = sbr.rel (%p1120_p7) target bundleno = 196 (0xc4), region = 101  ;;  %498 = vst [vmem:[#allocation3] sm:$0xff] (!%p1120_p7), %v1742_v4  ;;  %499 = vst [vmem:[#allocation3 + $0x8] sm:$0xff] (!%p1120_p7), %v1742_v4 }
  0xbe   : > { %500 = vst [vmem:[#allocation3 + $0x10] sm:$0xff] (!%p1120_p7), %v1742_v4  ;;  %501 = vst [vmem:[#allocation3 + $0x18] sm:$0xff] (!%p1120_p7), %v1742_v4 }
  0xbf   : > { %502 = vst [vmem:[#allocation3 + $0x20] sm:$0xff] (!%p1120_p7), %v1742_v4  ;;  %503 = vst [vmem:[#allocation3 + $0x28] sm:$0xff] (!%p1120_p7), %v1742_v4 }
  0xc0   : > { %504 = vst [vmem:[#allocation3 + $0x30] sm:$0xff] (!%p1120_p7), %v1742_v4  ;;  %505 = vst [vmem:[#allocation3 + $0x38] sm:$0xff] (!%p1120_p7), %v1742_v4 }
  0xc4 PF: > { %s2353_s15 = sld [smem:[#allocation22_spill]] }
  0xca   : > { %p1121_p1 = scmp.ne.s32.totalorder %s2353_s15, 0 }
  0xcb   : > { %v1434_v5 = vld [vmem:[%s421_s16] sm:$0xff] (!%p1121_p1)   ;;  %v1435_v6 = vld [vmem:[%s421_s16 + $0x8] sm:$0xff] (!%p1121_p1)   ;;  %vm555_vm0 = vcmask (!%p1121_p1), 261120  }
  0xcc   : > { %509 = sbr.rel (%p1121_p1) target bundleno = 436 (0x1b4), region = 105  ;;  %1214 = vmatprep.subr.bf16.mxu0 (!%p1121_p1), %v1434_v5  ;;  %1250 = vmatprep.subr.bf16.mxu1 (!%p1121_p1), %v1434_v5  ;;  %v1436_v7 = vld [vmem:[%s489_s9] sm:$0xff] (!%p1121_p1)   ;;  %v1437_v8 = vld [vmem:[%s489_s9 + $0x10] sm:$0xff] (!%p1121_p1)   ;;  %v1438_v9 = vld [vmem:[%s489_s9 + $0x8] sm:$0xff] (!%p1121_p1)  }
  0xcd   : > { %1215 = vmatpush3.bf16.msra.mxu0 (!%p1121_p1), %v1434_v5  ;;  %1252 = vmatpush3.bf16.msra.mxu1 (!%p1121_p1), %v1434_v5  ;;  %v1439_v10 = vld [vmem:[%s489_s9 + $0x18] sm:$0xff] (!%p1121_p1)   ;;  %v1193_v11 = vld [vmem:[%s2101_s23 + $0x8] sm:$0xff] (!%p1121_p1)   ;;  %v1175_v14 = vld [vmem:[%s2101_s23] sm:$0xff] (!%p1121_p1)  }
  0xce   : > { %1216 = vmatprep.subr.bf16.mxu0 (!%p1121_p1), %v1435_v6  ;;  %1251 = vmatprep.subr.bf16.mxu1 (!%p1121_p1), %v1435_v6  ;;  %v1190_v12 = vld [vmem:[%s2094_s6 + $0x8] sm:$0xff] (!%p1121_p1)   ;;  %v1195_v13 = vld [vmem:[%s2101_s23 + $0x18] sm:$0xff] (!%p1121_p1)   ;;  %v1194_v16 = vld [vmem:[%s2101_s23 + $0x10] sm:$0xff] (!%p1121_p1)   ;;  %v1180_v21 = vunpack.c.l.bf16 (!%p1121_p1), %v1193_v11  ;;  %v1176_v23 = vunpack.c.l.bf16 (!%p1121_p1), %v1175_v14  ;;  %v1181_v26 = vunpack.c.h.bf16 (!%p1121_p1), %v1193_v11  ;;  %v1177_v32 = vunpack.c.h.bf16 (!%p1121_p1), %v1175_v14 }
  0xcf   : > { %1218 = vmatprep.mubr.msk.bf16.mxu0 (!%p1121_p1), %vm555_vm0, %v1436_v7  ;;  %1222 = vmatprep.mubr.msk.bf16.mxu1 (!%p1121_p1), %vm555_vm0, %v1437_v8  ;;  %v1192_v15 = vld [vmem:[%s2094_s6 + $0x18] sm:$0xff] (!%p1121_p1)   ;;  %v1159_v17 = vld [vmem:[%s2094_s6] sm:$0xff] (!%p1121_p1)   ;;  %v1191_v18 = vld [vmem:[%s2094_s6 + $0x10] sm:$0xff] (!%p1121_p1)   ;;  %v1164_v20 = vunpack.c.l.bf16 (!%p1121_p1), %v1190_v12  ;;  %v1188_v22 = vunpack.c.l.bf16 (!%p1121_p1), %v1195_v13  ;;  %v1184_v25 = vunpack.c.l.bf16 (!%p1121_p1), %v1194_v16  ;;  %v1189_v27 = vunpack.c.h.bf16 (!%p1121_p1), %v1195_v13  ;;  %s2355_s6 = sld [smem:[#allocation21_spill]] (!%p1121_p1) }
  0xd0   : > { %v1132_v19 = vld [vmem:[%s484_s10] ss:$0 sm:$0xff] (!%p1121_p1)  ;;  %v1172_v24 = vunpack.c.l.bf16 (!%p1121_p1), %v1192_v15  ;;  %v1160_v30 = vunpack.c.l.bf16 (!%p1121_p1), %v1159_v17  ;;  %v1168_v31 = vunpack.c.l.bf16 (!%p1121_p1), %v1191_v18  ;;  %v1185_v33 = vunpack.c.h.bf16 (!%p1121_p1), %v1194_v16 }
  0xd1   : > { %1217 = vmatpush3.bf16.msra.mxu0 (!%p1121_p1), %v1435_v6  ;;  %1253 = vmatpush3.bf16.msra.mxu1 (!%p1121_p1), %v1435_v6  ;;  %v1165_v38 = vunpack.c.h.bf16 (!%p1121_p1), %v1190_v12  ;;  %v1173_v39 = vunpack.c.h.bf16 (!%p1121_p1), %v1192_v15  ;;  %v1161_v44 = vunpack.c.h.bf16 (!%p1121_p1), %v1159_v17  ;;  %v1169_v45 = vunpack.c.h.bf16 (!%p1121_p1), %v1191_v18 }
  0xd4   : > { %1219 = vmatmul.mubr.msk.bf16.vlgmr.msra.gmra.mrb[0].mxu0 %vm555_vm0, %v1438_v9  ;;  %1223 = vmatmul.mubr.msk.bf16.vlgmr.msra.gmra.mrb[0].mxu1 %vm555_vm0, %v1439_v10 }
  0xd5   : > { %s1155_s23 = sshll.u32 %s2355_s6, 5 }
  0xd6   : > { %s701_s13 = scalar_lea.vmem [#allocation2], %s1155_s23 }
 0x1a7   : > { %v1220_v28 = vpop.f32.mrb[0].mxu0  ;;  %v1224_v29 = vpop.f32.mrb[0].mxu1 }
 0x1a8   : > { %v641_v34 = vadd.f32 %v1220_v28, %v1132_v19  ;;  %v645_v35 = vadd.f32 %v1224_v29, %v1132_v19  ;;  %v602_v36 = vpop.f32.mrb[1].mxu0  ;;  %v618_v37 = vpop.f32.mrb[1].mxu1 }
 0x1a9   : > { %v639_v40 = vadd.f32 %v1132_v19, %v602_v36  ;;  %v643_v41 = vadd.f32 %v1132_v19, %v618_v37  ;;  %v1221_v42 = vpop.f32.mrb[2].mxu0  ;;  %v1225_v43 = vpop.f32.mrb[2].mxu1 }
 0x1aa   : > { %v681_v46 = vmul.f32 %v1180_v21, %v641_v34  ;;  %v685_v47 = vmul.f32 %v1188_v22, %v645_v35  ;;  %v642_v48 = vadd.f32 %v1221_v42, %v1132_v19  ;;  %v646_v49 = vadd.f32 %v1225_v43, %v1132_v19  ;;  %v605_v50 = vpop.f32.mrb[3].mxu0  ;;  %v621_v51 = vpop.f32.mrb[3].mxu1 }
 0x1ab   : > { %v679_v52 = vmul.f32 %v1176_v23, %v639_v40  ;;  %v683_v53 = vmul.f32 %v1184_v25, %v643_v41  ;;  %v640_v54 = vadd.f32 %v1132_v19, %v605_v50  ;;  %v644_v55 = vadd.f32 %v1132_v19, %v621_v51 }
 0x1ac   : > { %v682_v56 = vmul.f32 %v1181_v26, %v642_v48  ;;  %v686_v57 = vmul.f32 %v1189_v27, %v646_v49  ;;  %v689_v60 = vadd.f32 %v1164_v20, %v681_v46  ;;  %v693_v61 = vadd.f32 %v1172_v24, %v685_v47 }
 0x1ad   : > { %v680_v58 = vmul.f32 %v1177_v32, %v640_v54  ;;  %v684_v59 = vmul.f32 %v1185_v33, %v644_v55  ;;  %v687_v0 = vadd.f32 %v1160_v30, %v679_v52  ;;  %v691_v1 = vadd.f32 %v1168_v31, %v683_v53 }
 0x1ae   : > { %v690_v62 = vadd.f32 %v1165_v38, %v682_v56  ;;  %v694_v63 = vadd.f32 %v1173_v39, %v686_v57 }
 0x1af   : > { %v688_v2 = vadd.f32 %v1161_v44, %v680_v58  ;;  %v692_v3 = vadd.f32 %v1169_v45, %v684_v59 }
 0x1b0   : > { %v696_v4 = vpack.c.bf16 %v690_v62, %v689_v60  ;;  %v698_v5 = vpack.c.bf16 %v694_v63, %v693_v61 }
 0x1b1   : > { %v695_v6 = vpack.c.bf16 %v688_v2, %v687_v0  ;;  %v697_v7 = vpack.c.bf16 %v692_v3, %v691_v1 }
 0x1b2   : > { %703 = vst [vmem:[%s701_s13 + $0x8] sm:$0xff] %v696_v4  ;;  %705 = vst [vmem:[%s701_s13 + $0x18] sm:$0xff] %v698_v5 }
 0x1b3   : > { %702 = vst [vmem:[%s701_s13] sm:$0xff] %v695_v6  ;;  %704 = vst [vmem:[%s701_s13 + $0x10] sm:$0xff] %v697_v7 }
 0x1b4 PF: > { %s2356_s20 = sld [smem:[#allocation21_spill]]  ;;  %v1440_v8 = vld [vmem:[%s2112_s0] sm:$0xff]   ;;  %v1441_v9 = vld [vmem:[%s2112_s0 + $0x8] sm:$0xff]   ;;  %v1442_v10 = vld [vmem:[%s2112_s0 + $0x10] sm:$0xff]  }
 0x1b5   : > { %1226 = vmatprep.subr.bf16.mxu0 %v1440_v8  ;;  %1254 = vmatprep.subr.bf16.mxu1 %v1440_v8  ;;  %v1443_v11 = vld [vmem:[%s2112_s0 + $0x18] sm:$0xff]   ;;  %v1444_v14 = vld [vmem:[%s2112_s0 + $0x20] sm:$0xff]   ;;  %v1445_v15 = vld [vmem:[%s2112_s0 + $0x28] sm:$0xff]  }
 0x1b6   : > { %1227 = vmatpush3.bf16.msra.mxu0 %v1440_v8  ;;  %1262 = vmatpush3.bf16.msra.mxu1 %v1440_v8  ;;  %v1446_v16 = vld [vmem:[%s2112_s0 + $0x30] sm:$0xff]   ;;  %v1447_v17 = vld [vmem:[%s2112_s0 + $0x38] sm:$0xff]   ;;  %v713_v22 = vld [vmem:[#allocation3] sm:$0xff] }
 0x1b7   : > { %1228 = vmatprep.subr.bf16.mxu0 %v1441_v9  ;;  %1255 = vmatprep.subr.bf16.mxu1 %v1441_v9  ;;  %v715_v20 = vld [vmem:[#allocation3 + $0x10] sm:$0xff]  ;;  %v717_v23 = vld [vmem:[#allocation3 + $0x20] sm:$0xff]  ;;  %v716_v26 = vld [vmem:[#allocation3 + $0x18] sm:$0xff] }
 0x1b8   : > { %v719_v21 = vld [vmem:[#allocation3 + $0x30] sm:$0xff]  ;;  %v720_v27 = vld [vmem:[#allocation3 + $0x38] sm:$0xff]  ;;  %v714_v32 = vld [vmem:[#allocation3 + $0x8] sm:$0xff] }
 0x1b9   : > { %v718_v33 = vld [vmem:[#allocation3 + $0x28] sm:$0xff] }
 0x1ba   : > { %s1156_s27 = sshll.u32 %s2356_s20, 5  ;;  %1229 = vmatpush3.bf16.msra.mxu0 %v1441_v9  ;;  %1263 = vmatpush3.bf16.msra.mxu1 %v1441_v9  ;;  %p1145_p12 = scmp.ne.s32.totalorder %s2356_s20, 1 }
 0x1bb   : > { %1230 = vmatprep.subr.bf16.mxu0 %v1442_v10  ;;  %1256 = vmatprep.subr.bf16.mxu1 %v1442_v10  ;;  %s2156_s8 = scalar_lea.vmem [#allocation2], %s1156_s27 }
 0x1bc   : > { %v709_v12 = vld [vmem:[%s2156_s8] sm:$0xff]  ;;  %v711_v13 = vld [vmem:[%s2156_s8 + $0x10] sm:$0xff]  ;;  %v710_v18 = vld [vmem:[%s2156_s8 + $0x8] sm:$0xff] }
 0x1bd   : > { %1242 = vmatprep.mubr.bf16.mxu0 %v709_v12  ;;  %1246 = vmatprep.mubr.bf16.mxu1 %v711_v13  ;;  %v712_v19 = vld [vmem:[%s2156_s8 + $0x18] sm:$0xff] }
 0x1be   : > { %1231 = vmatpush3.bf16.msra.mxu0 %v1442_v10  ;;  %1264 = vmatpush3.bf16.msra.mxu1 %v1442_v10 }
 0x1bf   : > { %1232 = vmatprep.subr.bf16.mxu0 %v1443_v11  ;;  %1257 = vmatprep.subr.bf16.mxu1 %v1443_v11 }
 0x1c2   : > { %1233 = vmatpush3.bf16.msra.mxu0 %v1443_v11  ;;  %1265 = vmatpush3.bf16.msra.mxu1 %v1443_v11 }
 0x1c3   : > { %1234 = vmatprep.subr.bf16.mxu0 %v1444_v14  ;;  %1258 = vmatprep.subr.bf16.mxu1 %v1444_v14 }
 0x1c6   : > { %1235 = vmatpush3.bf16.msra.mxu0 %v1444_v14  ;;  %1266 = vmatpush3.bf16.msra.mxu1 %v1444_v14 }
 0x1c7   : > { %1236 = vmatprep.subr.bf16.mxu0 %v1445_v15  ;;  %1259 = vmatprep.subr.bf16.mxu1 %v1445_v15 }
 0x1ca   : > { %1237 = vmatpush3.bf16.msra.mxu0 %v1445_v15  ;;  %1267 = vmatpush3.bf16.msra.mxu1 %v1445_v15 }
 0x1cb   : > { %1238 = vmatprep.subr.bf16.mxu0 %v1446_v16  ;;  %1260 = vmatprep.subr.bf16.mxu1 %v1446_v16 }
 0x1ce   : > { %1239 = vmatpush3.bf16.msra.mxu0 %v1446_v16  ;;  %1268 = vmatpush3.bf16.msra.mxu1 %v1446_v16 }
 0x1cf   : > { %1240 = vmatprep.subr.bf16.mxu0 %v1447_v17  ;;  %1261 = vmatprep.subr.bf16.mxu1 %v1447_v17 }
 0x1d2   : > { %1241 = vmatpush3.bf16.msra.mxu0 %v1447_v17  ;;  %1269 = vmatpush3.bf16.msra.mxu1 %v1447_v17 }
 0x1d5   : > { %1243 = vmatmul.mubr.bf16.vlgmr.msra.gmra.mrb[0].mxu0 %v710_v18  ;;  %1247 = vmatmul.mubr.bf16.vlgmr.msra.gmra.mrb[0].mxu1 %v712_v19 }
 0x2a8   : > { %v1244_v24 = vpop.f32.mrb[0].mxu0  ;;  %v1248_v25 = vpop.f32.mrb[0].mxu1  ;;  %869 = sbr.rel (%p1145_p12) target bundleno = 712 (0x2c8), region = 109 }
 0x2a9   : > { %v852_v28 = vadd.f32 %v1244_v24, %v715_v20  ;;  %v856_v29 = vadd.f32 %v1248_v25, %v719_v21  ;;  %v819_v30 = vpop.f32.mrb[1].mxu0  ;;  %v835_v31 = vpop.f32.mrb[1].mxu1 }
 0x2aa   : > { %v850_v34 = vadd.f32 %v819_v30, %v713_v22  ;;  %v854_v35 = vadd.f32 %v835_v31, %v717_v23  ;;  %v1245_v36 = vpop.f32.mrb[2].mxu0  ;;  %v1249_v37 = vpop.f32.mrb[2].mxu1 }
 0x2ab   : > { %860 = vst [vmem:[#allocation3 + $0x10] sm:$0xff] %v852_v28  ;;  %864 = vst [vmem:[#allocation3 + $0x30] sm:$0xff] %v856_v29  ;;  %v853_v38 = vadd.f32 %v1245_v36, %v716_v26  ;;  %v857_v39 = vadd.f32 %v1249_v37, %v720_v27  ;;  %v822_v40 = vpop.f32.mrb[3].mxu0  ;;  %v838_v41 = vpop.f32.mrb[3].mxu1 }
 0x2ac   : > { %858 = vst [vmem:[#allocation3] sm:$0xff] %v850_v34  ;;  %862 = vst [vmem:[#allocation3 + $0x20] sm:$0xff] %v854_v35  ;;  %v851_v42 = vadd.f32 %v822_v40, %v714_v32  ;;  %v855_v43 = vadd.f32 %v838_v41, %v718_v33 }
 0x2ad   : > { %861 = vst [vmem:[#allocation3 + $0x18] sm:$0xff] %v853_v38  ;;  %865 = vst [vmem:[#allocation3 + $0x38] sm:$0xff] %v857_v39 }
 0x2ae   : > { %859 = vst [vmem:[#allocation3 + $0x8] sm:$0xff] %v851_v42  ;;  %863 = vst [vmem:[#allocation3 + $0x28] sm:$0xff] %v855_v43 }
 0x2b2   : > { %v872_v46 = vld [vmem:[#allocation3 + $0x10] sm:$0xff] }
 0x2b3   : > { %v870_v44 = vld [vmem:[#allocation3] sm:$0xff]  ;;  %v876_v50 = vld [vmem:[#allocation3 + $0x30] sm:$0xff] }
 0x2b4   : > { %1448 = vtanh.f32 %v870_v44  ;;  %v873_v47 = vld [vmem:[#allocation3 + $0x18] sm:$0xff]  ;;  %v874_v48 = vld [vmem:[#allocation3 + $0x20] sm:$0xff] }
 0x2b5   : > { %v871_v45 = vld [vmem:[#allocation3 + $0x8] sm:$0xff]  ;;  %v877_v51 = vld [vmem:[#allocation3 + $0x38] sm:$0xff] }
 0x2b6   : > { %1450 = vtanh.f32 %v871_v45  ;;  %v875_v49 = vld [vmem:[#allocation3 + $0x28] sm:$0xff] }
 0x2b7   : > { %1452 = vtanh.f32 %v872_v46 }
 0x2b8   : > { %1454 = vtanh.f32 %v873_v47 }
 0x2b9   : > { %1456 = vtanh.f32 %v874_v48 }
 0x2ba   : > { %1458 = vtanh.f32 %v875_v49 }
 0x2bb   : > { %1460 = vtanh.f32 %v876_v50 }
 0x2bc   : > { %1462 = vtanh.f32 %v877_v51 }
 0x2be   : > { %v1449_v52 = vpop.eup %1448 }
 0x2bf   : > { %886 = vst [vmem:[%s2133_s24] sm:$0xff] %v1449_v52 }
 0x2c0   : > { %v1451_v53 = vpop.eup %1450 }
 0x2c1   : > { %v1453_v54 = vpop.eup %1452  ;;  %887 = vst [vmem:[%s2133_s24 + $0x8] sm:$0xff] %v1451_v53 }
 0x2c2   : > { %v1455_v55 = vpop.eup %1454  ;;  %888 = vst [vmem:[%s2133_s24 + $0x10] sm:$0xff] %v1453_v54 }
 0x2c3   : > { %v1457_v56 = vpop.eup %1456  ;;  %889 = vst [vmem:[%s2133_s24 + $0x18] sm:$0xff] %v1455_v55 }
 0x2c4   : > { %v1459_v57 = vpop.eup %1458  ;;  %890 = vst [vmem:[%s2133_s24 + $0x20] sm:$0xff] %v1457_v56 }
 0x2c5   : > { %v1461_v58 = vpop.eup %1460  ;;  %891 = vst [vmem:[%s2133_s24 + $0x28] sm:$0xff] %v1459_v57 }
 0x2c6   : > { %v1463_v59 = vpop.eup %1462  ;;  %892 = vst [vmem:[%s2133_s24 + $0x30] sm:$0xff] %v1461_v58 }
 0x2c7   : > { %893 = vst [vmem:[%s2133_s24 + $0x38] sm:$0xff] %v1463_v59 }
 0x2c8 PF: > { %s2357_s0 = sld [smem:[#allocation23_spill]]  ;;  %s2358_s19 = sld [smem:[#allocation22_spill]] }
 0x2c9   : > { %s2360_s10 = sld [smem:[#allocation34_spill]]  ;;  %s910_s18 = sshll.u32 %s2133_s24, 4  ;;  %s2178_s18 = int_to_ptr.vmem [resolvable:$true] %s910_s18 }
 0x2ca   : > { %s2361_s16 = sld [smem:[#allocation39_spill]]  ;;  %s2187_s29 = scalar_lea.sflag [#allocation6], %s477_s3 }
 0x2cb   : > { %s1548_s6 = scalar_lea.vmem %s2178_s18, 1024  ;;  %s1743_s24 = smov [#allocation11]  }
 0x2cc   : > { %p1549_p0 = scmp.ne.s32.totalorder %s2178_s18, %s1548_s6  ;;  %s1552_s23 = sshll.u32 %s1743_s24, 4  ;;  %s1553_s23 = int_to_ptr.vmem [resolvable:$false] %s1552_s23 }
 0x2cd   : > { %s1554_s13 = scalar_lea.vmem %s1553_s23, 2048  ;;  %p1555_p9 = scmp.lt.s32.totalorder %s2178_s18, %s1553_s23 }
 0x2ce   : > { %s1157_s7 = sshll.u32 %s2357_s0, 4  ;;  %p1556_p6 = scmp.lt.s32.totalorder %s1554_s13, %s1548_s6 }
 0x2cf   : > { %s907_s21 = sadd.s32 %s2358_s19, %s1157_s7  ;;  %p2362_p5 = scmp.ne.s32.totalorder %s2360_s10, 0 }
 0x2d0   : > { %s1149_s2 = sshll.u32 %s907_s21, 7  ;;  %p1557_p3 = por %p1556_p6, %p1555_p9 }
 0x2d1   : > { %s2183_s17 = scalar_lea.hbm %s2361_s16, %s1149_s2  ;;  %p1550_p4 = pnand %p1549_p0, %p2362_p5 }
 0x2d3   : > { %p1551_p13 = pneg %p1550_p4 }
 0x2d5   : > { %p1558_p8 = pnand %p1557_p3, %p1551_p13 }
 0x2d7   : > { %1561 = shalt.err (!%p1558_p8)
}
 0x2d8   : > { %s1562_s3 = scalar_lea.hbm %s2183_s17, 1024  ;;  %s1566_s8 = scalar_lea.hbm %s2361_s16, 4096 }
 0x2d9   : > { %p1563_p11 = scmp.ne.s32.totalorder %s2183_s17, %s1562_s3  ;;  %p1567_p7 = scmp.lt.u32.totalorder %s2183_s17, %s2361_s16 }
 0x2da   : > { %p1568_p1 = scmp.lt.u32.totalorder %s1566_s8, %s1562_s3  ;;  %p1570_p0 = scmp.lt.u32.totalorder %s1562_s3, %s2183_s17 }
 0x2db   : > { %p1564_p10 = pnand %p1563_p11, %p2362_p5 }
 0x2dc   : > { %p1569_p12 = por %p1568_p1, %p1567_p7 }
 0x2dd   : > { %p1565_p2 = pneg %p1564_p10 }
 0x2de   : > { %p1571_p4 = por %p1570_p0, %p1569_p12 }
 0x2e0   : > { %p1572_p13 = pnand %p1571_p4, %p1565_p2 }
 0x2e2   : > { %1575 = shalt.err (!%p1572_p13)
}
 0x2e3   : > { %s1744_s22 = smov 128   ;;  %s1745_s7 = smov 256  }
 0x2e4   : > { %s1746_s21 = smov 8  }
 0x2e5   : > { %1276 = dma.vmem_to_hbm [thread:$0]  (%p2362_p5), %s2178_s18, 1024, %s2183_s17, %s2187_s29, %s1744_s22, %s1745_s7, %s1746_s21  }
 0x2e6 PF: > { %s2363_s2 = sld [smem:[#allocation16_spill]]  ;;  %p1282_p9 = scmp.ge.s32.totalorder %s1734_s14, 2 }
 0x2e7   : > { %s2364_s9 = sld [smem:[#allocation35_spill]] }
 0x2ec   : > { %s925_s15 = sand.u32 1, %s2363_s2  }
 0x2ed   : > { %p2365_p6 = scmp.ne.s32.totalorder %s2364_s9, 0  ;;  %s926_s6 = scalar_lea.sflag [#allocation6], %s925_s15 }
 0x2ef   : > { %p1279_p3 = pnand %p1282_p9, %p2365_p6 }
 0x2f1   : > { %1661 = dma.done.wait (!%p1279_p3), %s926_s6, 1024  }
 0x2f2   : > { %1663 = vsyncadd (!%p1279_p3), %s926_s6, 4294966272  ;;  %s25_s14 = sadd.s32 1, %s1734_s14   ;;  %s2367_s21 = sld [smem:[#allocation17_spill]] }
 0x2f3   : > { %p2216_p8 = scmp.ge.s32.totalorder %s25_s14, 10   ;;  %s2368_s22 = sld [smem:[#allocation18_spill]] }
 0x2f4   : > { %s2369_s23 = sld [smem:[#allocation33_spill]]  ;;  %s2370_s10 = sld [smem:[#allocation31_spill]] }
 0x2f5   : > { %s2371_s18 = sld [smem:[#allocation28_spill]]  ;;  %s2372_s17 = sld [smem:[#allocation20_spill]] }
 0x2f6   : > { %s2373_s7 = sld [smem:[#allocation30_spill]]  ;;  %s2374_s13 = sld [smem:[#allocation24_spill]] }
 0x2f7   : > { %s2375_s3 = sld [smem:[#allocation25_spill]]  ;;  %s2376_s20 = sld [smem:[#allocation26_spill]] }
 0x2f8   : > { %s2377_s0 = sld [smem:[#allocation29_spill]]  ;;  %s2379_s24 = smov %s1682_s25 }
 0x2f9   : > { %s2380_s25 = smov %s1686_s26  ;;  %s2382_s27 = smov %s1694_s28 }
 0x2fa   : > { %s2381_s26 = smov %s2370_s10  ;;  %s2384_s29 = smov %s1702_s30 }
 0x2fb   : > { %s2383_s28 = smov %s2371_s18  ;;  %s2385_s30 = smov %s2372_s17 }
 0x2fc   : > { %s2386_s8 = smov %s1722_s11  ;;  %s2387_s9 = smov %s1726_s12 }
 0x2fd   : > { %s2388_s10 = smov %s2374_s13  ;;  %s2389_s11 = smov %s2375_s3 }
 0x2fe   : > { %s2390_s12 = smov %s2376_s20  ;;  %s2391_s13 = smov %s2377_s0 }
 0x2ff   :  { %24 = sbr.rel (!%p2216_p8) target bundleno = 19 (0x13), region = 182 }
 0x306   :  { %931 = vsyncpa [#allocation5], 1 }
 0x307   :  { %933 = vsyncpa [#allocation5 + $0x1], 1 }
 0x308   :  { %934 = vsyncpa [#allocation8], 1 }
 0x309   :  { %936 = vsyncpa [#allocation8 + $0x1], 1 }
 0x30a   :  { %937 = vsyncpa [#allocation6], 1 }
 0x30b   :  { %939 = vsyncpa [#allocation6 + $0x1], 1 }

</bundles_post_ra>
